<compile_context>
chip_gen: v7x
topology: tpu7x:2x2x1
jax: 0.10.0
libtpu: 0.0.40
codegen_flags: <defaults>
</compile_context>

<pallas_src>
import functools

import jax
import jax.numpy as jnp
from jax import lax
from jax.experimental import pallas as pl
from jax.experimental.pallas import tpu as pltpu


# --------------------------------- the kernel --------------------------------

def bam_kernel(x_ref, masks_ref,
               ca_w1t_ref, ca_b1_ref, ca_w2ft_ref, ca_b2f_ref,
               s1_wt_ref, s1_b_ref, s2_wm_ref, s2_b_ref,
               s3_wm_ref, s3_b_ref, s4_wf_ref, s4_bf_ref,
               o_ref, *, shifts, inv_hw, mxu_bf16):
    """One image per grid step: x_ref / o_ref are [C, HWp] (HW on the lane axis)."""

    def mxu_dot(a, b):
        if mxu_bf16:
            a = a.astype(jnp.bfloat16)
            b = b.astype(jnp.bfloat16)
        return jnp.dot(a, b, preferred_element_type=jnp.float32)

    x = x_ref[...]                                            # [C, HWp] f32

    # ------------- channel attention ([C, 1] column form, BN folded) ---------
    feat = jnp.sum(x, axis=1, keepdims=True) * inv_hw         # global avg pool [C, 1]
    h = jnp.dot(ca_w1t_ref[...], feat,
                preferred_element_type=jnp.float32) + ca_b1_ref[...]       # [Crp, 1]
    h = jnp.maximum(h, 0.0)
    ca = jnp.dot(ca_w2ft_ref[...], h,
                 preferred_element_type=jnp.float32) + ca_b2f_ref[...]     # [C, 1]

    # ------------- spatial attention (all intermediates [Crp, HWp]) ----------
    masks = masks_ref[...]                                    # [9, HWp] 0/1 f32

    def dil_conv3x3(y, wm, b):
        # im2col via 9 XLU lane-rolls + host-precomputed boundary masks,
        # followed by ONE fused [Crp, 9*Crp] @ [9*Crp, HWp] MXU matmul.
        cols = []
        for t in range(9):
            if t == 4:                                        # center tap: always valid
                cols.append(y)
            else:
                cols.append(pltpu.roll(y, shifts[t], axis=1) * masks[t:t + 1, :])
        im2col = jnp.concatenate(cols, axis=0)                # [9*Crp, HWp], 8-row tiles
        return mxu_dot(wm, im2col) + b

    y = jnp.maximum(mxu_dot(s1_wt_ref[...], x) + s1_b_ref[...], 0.0)       # 1x1 conv
    y = jnp.maximum(dil_conv3x3(y, s2_wm_ref[...], s2_b_ref[...]), 0.0)
    y = jnp.maximum(dil_conv3x3(y, s3_wm_ref[...], s3_b_ref[...]), 0.0)
    sa = jnp.sum(y * s4_wf_ref[...], axis=0, keepdims=True) + s4_bf_ref[...]  # [1, HWp]

    # --------- combine: out = x * sigmoid(ca + sa), factored sigmoid ---------
    # sigmoid(ca + sa) = 1 / (1 + exp(-ca) * exp(-sa)); exp only on C + HW
    # elements, the per-element work is one VPU mul + one approx EUP reciprocal.
    e_ca = jnp.exp(-ca)                                       # [C, 1]
    e_sa = jnp.exp(-sa)                                       # [1, HWp]
    att = pl.reciprocal(1.0 + e_ca * e_sa, approx=True)       # [C, HWp]
    o_ref[...] = (x_ref[...] * att).astype(o_ref.dtype)       # fresh read: x not held live


# --------------------------------- wrapper -----------------------------------

def bam_pallas(x_nchw, params, dilation=4, mxu_bf16=False):
    """BAMLayer forward.  x_nchw: [B, C, H, W] f32 -> [B, C, H, W] f32."""
    B, C, H, W = x_nchw.shape
    HW = H * W
    HWp = ((HW + 127) // 128) * 128                    # lane-aligned spatial extent
    Cr = params['ca_w1'].shape[1]
    Crp = max(8, ((Cr + 7) // 8) * 8)                  # sublane-aligned reduced width

    x = x_nchw.reshape(B, C, HW).astype(jnp.float32)   # free reshape, no transpose
    if HWp != HW:
        x = jnp.pad(x, ((0, 0), (0, 0), (0, HWp - HW)))

    def pad_rows(a, rows):
        return jnp.pad(a, ((0, rows - a.shape[0]), (0, 0)))

    # ---- channel attention params ([C,1]-column form), BN1d folded ----
    ca_w1t = pad_rows(jnp.transpose(params['ca_w1']), Crp)                 # [Crp, C]
    ca_b1 = pad_rows(params['ca_b1'].reshape(Cr, 1), Crp)                  # [Crp, 1]
    ca_w2ft = jnp.pad(jnp.transpose(params['ca_w2'] * params['ca_scale']),
                      ((0, 0), (0, Crp - Cr)))                             # [C, Crp]
    ca_b2f = (params['ca_b2'] * params['ca_scale']
              + params['ca_shift']).reshape(C, 1)                          # [C, 1]

    # ---- spatial attention params, Cr zero-padded to Crp, BN2d folded ----
    s1_wt = pad_rows(jnp.transpose(params['s1_w']), Crp)                   # [Crp, C]
    s1_b = pad_rows(params['s1_b'].reshape(Cr, 1), Crp)                    # [Crp, 1]

    def conv_mat(w):      # [3,3,Cr,Cr] HWIO -> [Crp, 9*Crp], taps row-major (kh,kw)
        wp = jnp.pad(w, ((0, 0), (0, 0), (0, Crp - Cr), (0, Crp - Cr)))
        return jnp.transpose(wp, (3, 0, 1, 2)).reshape(Crp, 9 * Crp)

    s2_wm = conv_mat(params['s2_w'])
    s2_b = pad_rows(params['s2_b'].reshape(Cr, 1), Crp)
    s3_wm = conv_mat(params['s3_w'])
    s3_b = pad_rows(params['s3_b'].reshape(Cr, 1), Crp)
    sa_scale = params['sa_scale'].reshape(1, 1)
    sa_shift = params['sa_shift'].reshape(1, 1)
    s4_wf = pad_rows(params['s4_w'].reshape(Cr, 1), Crp) * sa_scale        # [Crp, 1]
    s4_bf = params['s4_b'].reshape(1, 1) * sa_scale + sa_shift             # [1, 1]

    # ---- 9 dilated-tap lane shifts (static) + boundary masks (host-side) ----
    pidx = jnp.arange(HW, dtype=jnp.int32)
    hh, ww = pidx // W, pidx % W
    mask_rows, shifts = [], []
    for kh in range(3):
        for kw in range(3):
            dh, dw = (kh - 1) * dilation, (kw - 1) * dilation
            valid = ((hh + dh >= 0) & (hh + dh < H) &
                     (ww + dw >= 0) & (ww + dw < W))
            mask_rows.append(valid.astype(jnp.float32))
            shifts.append(int((-(dh * W + dw)) % HWp))
    masks = jnp.stack(mask_rows, axis=0)                                   # [9, HW]
    if HWp != HW:
        masks = jnp.pad(masks, ((0, 0), (0, HWp - HW)))

    plist = [masks, ca_w1t, ca_b1, ca_w2ft, ca_b2f,
             s1_wt, s1_b, s2_wm, s2_b, s3_wm, s3_b, s4_wf, s4_bf]

    def full_spec(a):
        nd = a.ndim
        return pl.BlockSpec(a.shape, lambda b, _nd=nd: (0,) * _nd)

    in_specs = [pl.BlockSpec((None, C, HWp), lambda b: (b, 0, 0))]  # batch squeezed
    in_specs += [full_spec(a) for a in plist]
    out_spec = pl.BlockSpec((None, C, HWp), lambda b: (b, 0, 0))

    # Generation-aware VMEM budget: double-buffered in/out blocks + temporaries
    # (im2col, y, att, x copy, masks), clamped to v7x's 64 MiB physical VMEM.
    param_bytes = sum(int(a.size) * 4 for a in plist)
    block_bytes = C * HWp * 4
    temp_bytes = (9 * Crp + 6 * Crp + 3 * C + 16) * HWp * 4
    vmem_limit = int(min(max(2 * (4 * block_bytes + temp_bytes + 2 * param_bytes),
                             32 * 1024 * 1024),
                         64 * 1024 * 1024))

    out = pl.pallas_call(
        functools.partial(bam_kernel, shifts=tuple(shifts), inv_hw=1.0 / HW,
                          mxu_bf16=mxu_bf16),
        out_shape=jax.ShapeDtypeStruct((B, C, HWp), jnp.float32),
        grid=(B,),
        in_specs=in_specs,
        out_specs=out_spec,
        compiler_params=pltpu.CompilerParams(
            dimension_semantics=("parallel",),
            vmem_limit_bytes=vmem_limit),
    )(x, *plist)

    if HWp != HW:
        out = out[:, :, :HW]
    return out.reshape(B, C, H, W)                              # free reshape back


# ------------------------------ pure-JAX reference ----------------------------

def bam_reference(x_nchw, params, dilation=4):
    x = jnp.transpose(x_nchw, (0, 2, 3, 1)).astype(jnp.float32)   # NHWC
    p = params

    feat = x.mean(axis=(1, 2))                                            # [B, C]
    h = jax.nn.relu(feat @ p['ca_w1'] + p['ca_b1'][0])
    h = h @ p['ca_w2'] + p['ca_b2'][0]
    ca = h * p['ca_scale'][0] + p['ca_shift'][0]                          # [B, C]

    y = jax.nn.relu(jnp.einsum('bhwc,cr->bhwr', x, p['s1_w']) + p['s1_b'][0])

    def dconv(y, w, b):
        out = lax.conv_general_dilated(
            y, w, window_strides=(1, 1),
            padding=((dilation, dilation), (dilation, dilation)),
            rhs_dilation=(dilation, dilation),
            dimension_numbers=('NHWC', 'HWIO', 'NHWC'),
            precision=lax.Precision.HIGHEST)
        return out + b[0]

    y = jax.nn.relu(dconv(y, p['s2_w'], p['s2_b']))
    y = jax.nn.relu(dconv(y, p['s3_w'], p['s3_b']))
    sa = jnp.einsum('bhwr,ro->bhwo', y, p['s4_w']) + p['s4_b'][0]         # [B,H,W,1]
    sa = sa * p['sa_scale'][0, 0] + p['sa_shift'][0, 0]

    att = jax.nn.sigmoid(ca[:, None, None, :] + sa)
    out = x * att
    return jnp.transpose(out, (0, 3, 1, 2))                               # back to NCHW


# ----------------------------------- main -------------------------------------

if __name__ == "__main__":
    B, C, H, W = 2, 64, 16, 16
    reduction_ratio = 16
    dilation = 4
    Cr = C // reduction_ratio
    eps = 1e-5

    key = jax.random.PRNGKey(0)
    ks = jax.random.split(key, 24)

    def u(k, shape, s=0.3):
        return jax.random.uniform(k, shape, jnp.float32, -s, s)

    # Channel attention params (Linear C->Cr, Linear Cr->C, BatchNorm1d(C) eval-folded)
    ca_gamma = 1.0 + u(ks[4], (1, C), 0.1)
    ca_beta = u(ks[5], (1, C))
    ca_mean = u(ks[6], (1, C))
    ca_var = jnp.abs(u(ks[7], (1, C))) + 0.5
    ca_scale = ca_gamma / jnp.sqrt(ca_var + eps)
    ca_shift = ca_beta - ca_mean * ca_scale

    # Spatial attention BN2d(1) eval-folded
    sa_gamma = 1.0 + u(ks[16], (1, 1), 0.1)
    sa_beta = u(ks[17], (1, 1))
    sa_mean = u(ks[18], (1, 1))
    sa_var = jnp.abs(u(ks[19], (1, 1))) + 0.5
    sa_scale = sa_gamma / jnp.sqrt(sa_var + eps)
    sa_shift = sa_beta - sa_mean * sa_scale

    params = {
        'ca_w1': u(ks[0], (C, Cr)),          'ca_b1': u(ks[1], (1, Cr)),
        'ca_w2': u(ks[2], (Cr, C)),          'ca_b2': u(ks[3], (1, C)),
        'ca_scale': ca_scale,                'ca_shift': ca_shift,
        's1_w': u(ks[8], (C, Cr)),           's1_b': u(ks[9], (1, Cr)),
        's2_w': u(ks[10], (3, 3, Cr, Cr)),   's2_b': u(ks[11], (1, Cr)),
        's3_w': u(ks[12], (3, 3, Cr, Cr)),   's3_b': u(ks[13], (1, Cr)),
        's4_w': u(ks[14], (Cr, 1)),          's4_b': u(ks[15], (1, 1)),
        'sa_scale': sa_scale,                'sa_shift': sa_shift,
    }

    # PyTorch-convention NCHW input
    x = jax.random.normal(ks[23], (B, C, H, W), jnp.float32)

    out = bam_pallas(x, params, dilation)
    out = jax.block_until_ready(out)

    ref = bam_reference(x, params, dilation)
    max_err = float(jnp.max(jnp.abs(out - ref)))
    assert jnp.allclose(out, ref, rtol=5e-3, atol=5e-3), f"max abs err = {max_err}"

    print("KERNEL_OK")
</pallas_src>

<mosaic_0001>
module attributes {stable_mosaic.version = 11 : i64} {
  func.func @bam_kernel(%arg0: i32, %arg1: memref<1x64x256xf32, #tpu.memory_space<vmem>>, %arg2: memref<9x256xf32, #tpu.memory_space<vmem>>, %arg3: memref<8x64xf32, #tpu.memory_space<vmem>>, %arg4: memref<8x1xf32, #tpu.memory_space<vmem>>, %arg5: memref<64x8xf32, #tpu.memory_space<vmem>>, %arg6: memref<64x1xf32, #tpu.memory_space<vmem>>, %arg7: memref<8x64xf32, #tpu.memory_space<vmem>>, %arg8: memref<8x1xf32, #tpu.memory_space<vmem>>, %arg9: memref<8x72xf32, #tpu.memory_space<vmem>>, %arg10: memref<8x1xf32, #tpu.memory_space<vmem>>, %arg11: memref<8x72xf32, #tpu.memory_space<vmem>>, %arg12: memref<8x1xf32, #tpu.memory_space<vmem>>, %arg13: memref<8x1xf32, #tpu.memory_space<vmem>>, %arg14: memref<1x1xf32, #tpu.memory_space<vmem>>, %arg15: memref<1x64x256xf32, #tpu.memory_space<vmem>>) attributes {dimension_semantics = [#tpu.dimension_semantics<parallel>], iteration_bounds = array<i64: 2>, scalar_prefetch = 0 : i64, scratch_operands = 0 : i64, tpu.core_type = #tpu.core_type<tc>, window_params = [{transform_indices = @transform_0, window_bounds = array<i64: 1, 64, 256>}, {pipeline_mode = #tpu.pipeline_mode<synchronous>, transform_indices = @transform_1, window_bounds = array<i64: 9, 256>}, {pipeline_mode = #tpu.pipeline_mode<synchronous>, transform_indices = @transform_2, window_bounds = array<i64: 8, 64>}, {pipeline_mode = #tpu.pipeline_mode<synchronous>, transform_indices = @transform_3, window_bounds = array<i64: 8, 1>}, {pipeline_mode = #tpu.pipeline_mode<synchronous>, transform_indices = @transform_4, window_bounds = array<i64: 64, 8>}, {pipeline_mode = #tpu.pipeline_mode<synchronous>, transform_indices = @transform_5, window_bounds = array<i64: 64, 1>}, {pipeline_mode = #tpu.pipeline_mode<synchronous>, transform_indices = @transform_6, window_bounds = array<i64: 8, 64>}, {pipeline_mode = #tpu.pipeline_mode<synchronous>, transform_indices = @transform_7, window_bounds = array<i64: 8, 1>}, {pipeline_mode = #tpu.pipeline_mode<synchronous>, transform_indices = @transform_8, window_bounds = array<i64: 8, 72>}, {pipeline_mode = #tpu.pipeline_mode<synchronous>, transform_indices = @transform_9, window_bounds = array<i64: 8, 1>}, {pipeline_mode = #tpu.pipeline_mode<synchronous>, transform_indices = @transform_10, window_bounds = array<i64: 8, 72>}, {pipeline_mode = #tpu.pipeline_mode<synchronous>, transform_indices = @transform_11, window_bounds = array<i64: 8, 1>}, {pipeline_mode = #tpu.pipeline_mode<synchronous>, transform_indices = @transform_12, window_bounds = array<i64: 8, 1>}, {pipeline_mode = #tpu.pipeline_mode<synchronous>, transform_indices = @transform_13, window_bounds = array<i64: 1, 1>}, {transform_indices = @transform_14, window_bounds = array<i64: 1, 64, 256>}]} {
    %c0 = arith.constant 0 : index
    %c0_0 = arith.constant 0 : index
    %c0_1 = arith.constant 0 : index
    %0 = vector.load %arg1[%c0, %c0_0, %c0_1] : memref<1x64x256xf32, #tpu.memory_space<vmem>>, vector<1x64x256xf32>
    %1 = vector.shape_cast %0 : vector<1x64x256xf32> to vector<64x256xf32>
    %cst = arith.constant dense<0.000000e+00> : vector<64xf32>
    %2 = vector.multi_reduction <add>, %1, %cst [1] : vector<64x256xf32> to vector<64xf32>
    %3 = vector.shape_cast %2 : vector<64xf32> to vector<64x1xf32>
    %cst_2 = arith.constant 3.906250e-03 : f32
    %4 = vector.broadcast %cst_2 : f32 to vector<64x1xf32>
    %5 = arith.mulf %3, %4 : vector<64x1xf32>
    %c0_3 = arith.constant 0 : index
    %c0_4 = arith.constant 0 : index
    %6 = vector.load %arg3[%c0_3, %c0_4] : memref<8x64xf32, #tpu.memory_space<vmem>>, vector<8x64xf32>
    %cst_5 = arith.constant dense<0.000000e+00> : vector<8x1xf32>
    %7 = tpu.matmul %6, %5, %cst_5 {dimension_numbers = #tpu.dot_dimension_numbers<[1], [0], [0], [1], [0, 0, 1, 1], [], []>} : vector<8x64xf32>, vector<64x1xf32>, vector<8x1xf32> -> vector<8x1xf32>
    %c0_6 = arith.constant 0 : index
    %c0_7 = arith.constant 0 : index
    %8 = vector.load %arg4[%c0_6, %c0_7] : memref<8x1xf32, #tpu.memory_space<vmem>>, vector<8x1xf32>
    %9 = arith.addf %7, %8 : vector<8x1xf32>
    %cst_8 = arith.constant 0.000000e+00 : f32
    %10 = vector.broadcast %cst_8 : f32 to vector<8x1xf32>
    %11 = arith.maximumf %9, %10 : vector<8x1xf32>
    %c0_9 = arith.constant 0 : index
    %c0_10 = arith.constant 0 : index
    %12 = vector.load %arg5[%c0_9, %c0_10] : memref<64x8xf32, #tpu.memory_space<vmem>>, vector<64x8xf32>
    %cst_11 = arith.constant dense<0.000000e+00> : vector<64x1xf32>
    %13 = tpu.matmul %12, %11, %cst_11 {dimension_numbers = #tpu.dot_dimension_numbers<[1], [0], [0], [1], [0, 0, 1, 1], [], []>} : vector<64x8xf32>, vector<8x1xf32>, vector<64x1xf32> -> vector<64x1xf32>
    %c0_12 = arith.constant 0 : index
    %c0_13 = arith.constant 0 : index
    %14 = vector.load %arg6[%c0_12, %c0_13] : memref<64x1xf32, #tpu.memory_space<vmem>>, vector<64x1xf32>
    %15 = arith.addf %13, %14 : vector<64x1xf32>
    %c0_14 = arith.constant 0 : index
    %c0_15 = arith.constant 0 : index
    %16 = vector.load %arg2[%c0_14, %c0_15] : memref<9x256xf32, #tpu.memory_space<vmem>>, vector<9x256xf32>
    %c0_16 = arith.constant 0 : index
    %c0_17 = arith.constant 0 : index
    %17 = vector.load %arg7[%c0_16, %c0_17] : memref<8x64xf32, #tpu.memory_space<vmem>>, vector<8x64xf32>
    %cst_18 = arith.constant dense<0.000000e+00> : vector<8x256xf32>
    %18 = tpu.matmul %17, %1, %cst_18 {dimension_numbers = #tpu.dot_dimension_numbers<[1], [0], [0], [1], [0, 0, 1, 1], [], []>} : vector<8x64xf32>, vector<64x256xf32>, vector<8x256xf32> -> vector<8x256xf32>
    %c0_19 = arith.constant 0 : index
    %c0_20 = arith.constant 0 : index
    %19 = vector.load %arg8[%c0_19, %c0_20] : memref<8x1xf32, #tpu.memory_space<vmem>>, vector<8x1xf32>
    %20 = vector.broadcast %19 : vector<8x1xf32> to vector<8x256xf32>
    %21 = arith.addf %18, %20 : vector<8x256xf32>
    %cst_21 = arith.constant 0.000000e+00 : f32
    %22 = vector.broadcast %cst_21 : f32 to vector<8x256xf32>
    %23 = arith.maximumf %21, %22 : vector<8x256xf32>
    %c0_22 = arith.constant 0 : index
    %c0_23 = arith.constant 0 : index
    %24 = vector.load %arg9[%c0_22, %c0_23] : memref<8x72xf32, #tpu.memory_space<vmem>>, vector<8x72xf32>
    %c0_24 = arith.constant 0 : index
    %c0_25 = arith.constant 0 : index
    %25 = vector.load %arg10[%c0_24, %c0_25] : memref<8x1xf32, #tpu.memory_space<vmem>>, vector<8x1xf32>
    %c68_i32 = arith.constant 68 : i32
    %26 = tpu.dynamic_rotate %23 by %c68_i32 dim 1 : vector<8x256xf32>, i32 -> vector<8x256xf32>
    %27 = vector.extract_strided_slice %16 {offsets = [0, 0], sizes = [1, 256], strides = [1, 1]} : vector<9x256xf32> to vector<1x256xf32>
    %28 = vector.broadcast %27 : vector<1x256xf32> to vector<8x256xf32>
    %29 = arith.mulf %26, %28 : vector<8x256xf32>
    %c64_i32 = arith.constant 64 : i32
    %30 = tpu.dynamic_rotate %23 by %c64_i32 dim 1 : vector<8x256xf32>, i32 -> vector<8x256xf32>
    %31 = vector.extract_strided_slice %16 {offsets = [1, 0], sizes = [1, 256], strides = [1, 1]} : vector<9x256xf32> to vector<1x256xf32>
    %32 = vector.broadcast %31 : vector<1x256xf32> to vector<8x256xf32>
    %33 = arith.mulf %30, %32 : vector<8x256xf32>
    %c60_i32 = arith.constant 60 : i32
    %34 = tpu.dynamic_rotate %23 by %c60_i32 dim 1 : vector<8x256xf32>, i32 -> vector<8x256xf32>
    %35 = vector.extract_strided_slice %16 {offsets = [2, 0], sizes = [1, 256], strides = [1, 1]} : vector<9x256xf32> to vector<1x256xf32>
    %36 = vector.broadcast %35 : vector<1x256xf32> to vector<8x256xf32>
    %37 = arith.mulf %34, %36 : vector<8x256xf32>
    %c4_i32 = arith.constant 4 : i32
    %38 = tpu.dynamic_rotate %23 by %c4_i32 dim 1 : vector<8x256xf32>, i32 -> vector<8x256xf32>
    %39 = vector.extract_strided_slice %16 {offsets = [3, 0], sizes = [1, 256], strides = [1, 1]} : vector<9x256xf32> to vector<1x256xf32>
    %40 = vector.broadcast %39 : vector<1x256xf32> to vector<8x256xf32>
    %41 = arith.mulf %38, %40 : vector<8x256xf32>
    %c252_i32 = arith.constant 252 : i32
    %42 = tpu.dynamic_rotate %23 by %c252_i32 dim 1 : vector<8x256xf32>, i32 -> vector<8x256xf32>
    %43 = vector.extract_strided_slice %16 {offsets = [5, 0], sizes = [1, 256], strides = [1, 1]} : vector<9x256xf32> to vector<1x256xf32>
    %44 = vector.broadcast %43 : vector<1x256xf32> to vector<8x256xf32>
    %45 = arith.mulf %42, %44 : vector<8x256xf32>
    %c196_i32 = arith.constant 196 : i32
    %46 = tpu.dynamic_rotate %23 by %c196_i32 dim 1 : vector<8x256xf32>, i32 -> vector<8x256xf32>
    %47 = vector.extract_strided_slice %16 {offsets = [6, 0], sizes = [1, 256], strides = [1, 1]} : vector<9x256xf32> to vector<1x256xf32>
    %48 = vector.broadcast %47 : vector<1x256xf32> to vector<8x256xf32>
    %49 = arith.mulf %46, %48 : vector<8x256xf32>
    %c192_i32 = arith.constant 192 : i32
    %50 = tpu.dynamic_rotate %23 by %c192_i32 dim 1 : vector<8x256xf32>, i32 -> vector<8x256xf32>
    %51 = vector.extract_strided_slice %16 {offsets = [7, 0], sizes = [1, 256], strides = [1, 1]} : vector<9x256xf32> to vector<1x256xf32>
    %52 = vector.broadcast %51 : vector<1x256xf32> to vector<8x256xf32>
    %53 = arith.mulf %50, %52 : vector<8x256xf32>
    %c188_i32 = arith.constant 188 : i32
    %54 = tpu.dynamic_rotate %23 by %c188_i32 dim 1 : vector<8x256xf32>, i32 -> vector<8x256xf32>
    %55 = vector.extract_strided_slice %16 {offsets = [8, 0], sizes = [1, 256], strides = [1, 1]} : vector<9x256xf32> to vector<1x256xf32>
    %56 = vector.broadcast %55 : vector<1x256xf32> to vector<8x256xf32>
    %57 = arith.mulf %54, %56 : vector<8x256xf32>
    %58 = tpu.concatenate %29, %33, %37, %41, %23, %45, %49, %53, %57 in 0 : vector<8x256xf32>, vector<8x256xf32>, vector<8x256xf32>, vector<8x256xf32>, vector<8x256xf32>, vector<8x256xf32>, vector<8x256xf32>, vector<8x256xf32>, vector<8x256xf32> -> vector<72x256xf32>
    %cst_26 = arith.constant dense<0.000000e+00> : vector<8x256xf32>
    %59 = tpu.matmul %24, %58, %cst_26 {dimension_numbers = #tpu.dot_dimension_numbers<[1], [0], [0], [1], [0, 0, 1, 1], [], []>} : vector<8x72xf32>, vector<72x256xf32>, vector<8x256xf32> -> vector<8x256xf32>
    %60 = vector.broadcast %25 : vector<8x1xf32> to vector<8x256xf32>
    %61 = arith.addf %59, %60 : vector<8x256xf32>
    %cst_27 = arith.constant 0.000000e+00 : f32
    %62 = vector.broadcast %cst_27 : f32 to vector<8x256xf32>
    %63 = arith.maximumf %61, %62 : vector<8x256xf32>
    %c0_28 = arith.constant 0 : index
    %c0_29 = arith.constant 0 : index
    %64 = vector.load %arg11[%c0_28, %c0_29] : memref<8x72xf32, #tpu.memory_space<vmem>>, vector<8x72xf32>
    %c0_30 = arith.constant 0 : index
    %c0_31 = arith.constant 0 : index
    %65 = vector.load %arg12[%c0_30, %c0_31] : memref<8x1xf32, #tpu.memory_space<vmem>>, vector<8x1xf32>
    %c68_i32_32 = arith.constant 68 : i32
    %66 = tpu.dynamic_rotate %63 by %c68_i32_32 dim 1 : vector<8x256xf32>, i32 -> vector<8x256xf32>
    %67 = vector.extract_strided_slice %16 {offsets = [0, 0], sizes = [1, 256], strides = [1, 1]} : vector<9x256xf32> to vector<1x256xf32>
    %68 = vector.broadcast %67 : vector<1x256xf32> to vector<8x256xf32>
    %69 = arith.mulf %66, %68 : vector<8x256xf32>
    %c64_i32_33 = arith.constant 64 : i32
    %70 = tpu.dynamic_rotate %63 by %c64_i32_33 dim 1 : vector<8x256xf32>, i32 -> vector<8x256xf32>
    %71 = vector.extract_strided_slice %16 {offsets = [1, 0], sizes = [1, 256], strides = [1, 1]} : vector<9x256xf32> to vector<1x256xf32>
    %72 = vector.broadcast %71 : vector<1x256xf32> to vector<8x256xf32>
    %73 = arith.mulf %70, %72 : vector<8x256xf32>
    %c60_i32_34 = arith.constant 60 : i32
    %74 = tpu.dynamic_rotate %63 by %c60_i32_34 dim 1 : vector<8x256xf32>, i32 -> vector<8x256xf32>
    %75 = vector.extract_strided_slice %16 {offsets = [2, 0], sizes = [1, 256], strides = [1, 1]} : vector<9x256xf32> to vector<1x256xf32>
    %76 = vector.broadcast %75 : vector<1x256xf32> to vector<8x256xf32>
    %77 = arith.mulf %74, %76 : vector<8x256xf32>
    %c4_i32_35 = arith.constant 4 : i32
    %78 = tpu.dynamic_rotate %63 by %c4_i32_35 dim 1 : vector<8x256xf32>, i32 -> vector<8x256xf32>
    %79 = vector.extract_strided_slice %16 {offsets = [3, 0], sizes = [1, 256], strides = [1, 1]} : vector<9x256xf32> to vector<1x256xf32>
    %80 = vector.broadcast %79 : vector<1x256xf32> to vector<8x256xf32>
    %81 = arith.mulf %78, %80 : vector<8x256xf32>
    %c252_i32_36 = arith.constant 252 : i32
    %82 = tpu.dynamic_rotate %63 by %c252_i32_36 dim 1 : vector<8x256xf32>, i32 -> vector<8x256xf32>
    %83 = vector.extract_strided_slice %16 {offsets = [5, 0], sizes = [1, 256], strides = [1, 1]} : vector<9x256xf32> to vector<1x256xf32>
    %84 = vector.broadcast %83 : vector<1x256xf32> to vector<8x256xf32>
    %85 = arith.mulf %82, %84 : vector<8x256xf32>
    %c196_i32_37 = arith.constant 196 : i32
    %86 = tpu.dynamic_rotate %63 by %c196_i32_37 dim 1 : vector<8x256xf32>, i32 -> vector<8x256xf32>
    %87 = vector.extract_strided_slice %16 {offsets = [6, 0], sizes = [1, 256], strides = [1, 1]} : vector<9x256xf32> to vector<1x256xf32>
    %88 = vector.broadcast %87 : vector<1x256xf32> to vector<8x256xf32>
    %89 = arith.mulf %86, %88 : vector<8x256xf32>
    %c192_i32_38 = arith.constant 192 : i32
    %90 = tpu.dynamic_rotate %63 by %c192_i32_38 dim 1 : vector<8x256xf32>, i32 -> vector<8x256xf32>
    %91 = vector.extract_strided_slice %16 {offsets = [7, 0], sizes = [1, 256], strides = [1, 1]} : vector<9x256xf32> to vector<1x256xf32>
    %92 = vector.broadcast %91 : vector<1x256xf32> to vector<8x256xf32>
    %93 = arith.mulf %90, %92 : vector<8x256xf32>
    %c188_i32_39 = arith.constant 188 : i32
    %94 = tpu.dynamic_rotate %63 by %c188_i32_39 dim 1 : vector<8x256xf32>, i32 -> vector<8x256xf32>
    %95 = vector.extract_strided_slice %16 {offsets = [8, 0], sizes = [1, 256], strides = [1, 1]} : vector<9x256xf32> to vector<1x256xf32>
    %96 = vector.broadcast %95 : vector<1x256xf32> to vector<8x256xf32>
    %97 = arith.mulf %94, %96 : vector<8x256xf32>
    %98 = tpu.concatenate %69, %73, %77, %81, %63, %85, %89, %93, %97 in 0 : vector<8x256xf32>, vector<8x256xf32>, vector<8x256xf32>, vector<8x256xf32>, vector<8x256xf32>, vector<8x256xf32>, vector<8x256xf32>, vector<8x256xf32>, vector<8x256xf32> -> vector<72x256xf32>
    %cst_40 = arith.constant dense<0.000000e+00> : vector<8x256xf32>
    %99 = tpu.matmul %64, %98, %cst_40 {dimension_numbers = #tpu.dot_dimension_numbers<[1], [0], [0], [1], [0, 0, 1, 1], [], []>} : vector<8x72xf32>, vector<72x256xf32>, vector<8x256xf32> -> vector<8x256xf32>
    %100 = vector.broadcast %65 : vector<8x1xf32> to vector<8x256xf32>
    %101 = arith.addf %99, %100 : vector<8x256xf32>
    %cst_41 = arith.constant 0.000000e+00 : f32
    %102 = vector.broadcast %cst_41 : f32 to vector<8x256xf32>
    %103 = arith.maximumf %101, %102 : vector<8x256xf32>
    %c0_42 = arith.constant 0 : index
    %c0_43 = arith.constant 0 : index
    %104 = vector.load %arg13[%c0_42, %c0_43] : memref<8x1xf32, #tpu.memory_space<vmem>>, vector<8x1xf32>
    %105 = vector.broadcast %104 : vector<8x1xf32> to vector<8x256xf32>
    %106 = arith.mulf %103, %105 : vector<8x256xf32>
    %cst_44 = arith.constant dense<0.000000e+00> : vector<256xf32>
    %107 = vector.multi_reduction <add>, %106, %cst_44 [0] : vector<8x256xf32> to vector<256xf32>
    %108 = vector.shape_cast %107 : vector<256xf32> to vector<1x256xf32>
    %c0_45 = arith.constant 0 : index
    %c0_46 = arith.constant 0 : index
    %109 = vector.load %arg14[%c0_45, %c0_46] : memref<1x1xf32, #tpu.memory_space<vmem>>, vector<1x1xf32>
    %110 = vector.broadcast %109 : vector<1x1xf32> to vector<1x256xf32>
    %111 = arith.addf %108, %110 : vector<1x256xf32>
    %cst_47 = arith.constant 0.000000e+00 : f32
    %112 = vector.broadcast %cst_47 : f32 to vector<64x1xf32>
    %113 = arith.subf %112, %15 : vector<64x1xf32>
    %114 = math.exp %113 : vector<64x1xf32>
    %cst_48 = arith.constant 0.000000e+00 : f32
    %115 = vector.broadcast %cst_48 : f32 to vector<1x256xf32>
    %116 = arith.subf %115, %111 : vector<1x256xf32>
    %117 = math.exp %116 : vector<1x256xf32>
    %118 = vector.broadcast %114 : vector<64x1xf32> to vector<64x256xf32>
    %119 = vector.broadcast %117 : vector<1x256xf32> to vector<64x256xf32>
    %120 = arith.mulf %118, %119 : vector<64x256xf32>
    %cst_49 = arith.constant 1.000000e+00 : f32
    %121 = vector.broadcast %cst_49 : f32 to vector<64x256xf32>
    %122 = arith.addf %121, %120 : vector<64x256xf32>
    %123 = tpu.reciprocal %122 {approx = true} : vector<64x256xf32> -> vector<64x256xf32>
    %c0_50 = arith.constant 0 : index
    %c0_51 = arith.constant 0 : index
    %c0_52 = arith.constant 0 : index
    %124 = vector.load %arg1[%c0_50, %c0_51, %c0_52] : memref<1x64x256xf32, #tpu.memory_space<vmem>>, vector<1x64x256xf32>
    %125 = vector.shape_cast %124 : vector<1x64x256xf32> to vector<64x256xf32>
    %126 = arith.mulf %125, %123 : vector<64x256xf32>
    %c0_53 = arith.constant 0 : index
    %c0_54 = arith.constant 0 : index
    %c0_55 = arith.constant 0 : index
    %127 = vector.load %arg15[%c0_53, %c0_54, %c0_55] : memref<1x64x256xf32, #tpu.memory_space<vmem>>, vector<1x64x256xf32>
    %128 = vector.shape_cast %127 : vector<1x64x256xf32> to vector<64x256xf32>
    %129 = vector.shape_cast %126 : vector<64x256xf32> to vector<1x64x256xf32>
    tpu.vector_store %arg15[%c0_53, %c0_54, %c0_55], %129 {strides = array<i32>} : memref<1x64x256xf32, #tpu.memory_space<vmem>>, vector<1x64x256xf32>,
    return
  }
  func.func @transform_0(%arg0: i32) -> (i32, i32, i32) {
    %c0_i32 = arith.constant 0 : i32
    %c0_i32_0 = arith.constant 0 : i32
    %c0_i32_1 = arith.constant 0 : i32
    return %arg0, %c0_i32, %c0_i32_0 : i32, i32, i32
  }
  func.func @transform_1(%arg0: i32) -> (i32, i32) {
    %c0_i32 = arith.constant 0 : i32
    %c0_i32_0 = arith.constant 0 : i32
    %c0_i32_1 = arith.constant 0 : i32
    return %c0_i32, %c0_i32_0 : i32, i32
  }
  func.func @transform_2(%arg0: i32) -> (i32, i32) {
    %c0_i32 = arith.constant 0 : i32
    %c0_i32_0 = arith.constant 0 : i32
    %c0_i32_1 = arith.constant 0 : i32
    return %c0_i32, %c0_i32_0 : i32, i32
  }
  func.func @transform_3(%arg0: i32) -> (i32, i32) {
    %c0_i32 = arith.constant 0 : i32
    %c0_i32_0 = arith.constant 0 : i32
    %c0_i32_1 = arith.constant 0 : i32
    return %c0_i32, %c0_i32_0 : i32, i32
  }
  func.func @transform_4(%arg0: i32) -> (i32, i32) {
    %c0_i32 = arith.constant 0 : i32
    %c0_i32_0 = arith.constant 0 : i32
    %c0_i32_1 = arith.constant 0 : i32
    return %c0_i32, %c0_i32_0 : i32, i32
  }
  func.func @transform_5(%arg0: i32) -> (i32, i32) {
    %c0_i32 = arith.constant 0 : i32
    %c0_i32_0 = arith.constant 0 : i32
    %c0_i32_1 = arith.constant 0 : i32
    return %c0_i32, %c0_i32_0 : i32, i32
  }
  func.func @transform_6(%arg0: i32) -> (i32, i32) {
    %c0_i32 = arith.constant 0 : i32
    %c0_i32_0 = arith.constant 0 : i32
    %c0_i32_1 = arith.constant 0 : i32
    return %c0_i32, %c0_i32_0 : i32, i32
  }
  func.func @transform_7(%arg0: i32) -> (i32, i32) {
    %c0_i32 = arith.constant 0 : i32
    %c0_i32_0 = arith.constant 0 : i32
    %c0_i32_1 = arith.constant 0 : i32
    return %c0_i32, %c0_i32_0 : i32, i32
  }
  func.func @transform_8(%arg0: i32) -> (i32, i32) {
    %c0_i32 = arith.constant 0 : i32
    %c0_i32_0 = arith.constant 0 : i32
    %c0_i32_1 = arith.constant 0 : i32
    return %c0_i32, %c0_i32_0 : i32, i32
  }
  func.func @transform_9(%arg0: i32) -> (i32, i32) {
    %c0_i32 = arith.constant 0 : i32
    %c0_i32_0 = arith.constant 0 : i32
    %c0_i32_1 = arith.constant 0 : i32
    return %c0_i32, %c0_i32_0 : i32, i32
  }
  func.func @transform_10(%arg0: i32) -> (i32, i32) {
    %c0_i32 = arith.constant 0 : i32
    %c0_i32_0 = arith.constant 0 : i32
    %c0_i32_1 = arith.constant 0 : i32
    return %c0_i32, %c0_i32_0 : i32, i32
  }
  func.func @transform_11(%arg0: i32) -> (i32, i32) {
    %c0_i32 = arith.constant 0 : i32
    %c0_i32_0 = arith.constant 0 : i32
    %c0_i32_1 = arith.constant 0 : i32
    return %c0_i32, %c0_i32_0 : i32, i32
  }
  func.func @transform_12(%arg0: i32) -> (i32, i32) {
    %c0_i32 = arith.constant 0 : i32
    %c0_i32_0 = arith.constant 0 : i32
    %c0_i32_1 = arith.constant 0 : i32
    return %c0_i32, %c0_i32_0 : i32, i32
  }
  func.func @transform_13(%arg0: i32) -> (i32, i32) {
    %c0_i32 = arith.constant 0 : i32
    %c0_i32_0 = arith.constant 0 : i32
    %c0_i32_1 = arith.constant 0 : i32
    return %c0_i32, %c0_i32_0 : i32, i32
  }
  func.func @transform_14(%arg0: i32) -> (i32, i32, i32) {
    %c0_i32 = arith.constant 0 : i32
    %c0_i32_0 = arith.constant 0 : i32
    %c0_i32_1 = arith.constant 0 : i32
    return %arg0, %c0_i32, %c0_i32_0 : i32, i32, i32
  }
}

</mosaic_0001>

<bundles_post_ra>
// kernel: tpu_custom_call.1
= control target key start
LH: loop header
LB: loop body
LE: loop exit
PB: predicated region body
PF: predicated region fallthrough
CT: control target
= control target key end

     0   :  { %s2459_s0 = inlined_call_operand.hbm [shape: f32[2,64,256], index: 0, kind: input, shape index: {}]   ;;  %s2460_s1 = inlined_call_operand.vmem [shape: f32[9,256], index: 1, kind: input, shape index: {}]   ;;  %s2461_s2 = inlined_call_operand.vmem [shape: f32[8,64], index: 2, kind: input, shape index: {}]   ;;  %s2462_s3 = inlined_call_operand.vmem [shape: f32[8,1], index: 3, kind: input, shape index: {}]   ;;  %s2463_s4 = inlined_call_operand.vmem [shape: f32[64,8], index: 4, kind: input, shape index: {}]   ;;  %s2464_s5 = inlined_call_operand.vmem [shape: f32[64,1], index: 5, kind: input, shape index: {}]   ;;  %s2465_s6 = inlined_call_operand.vmem [shape: f32[8,64], index: 6, kind: input, shape index: {}]   ;;  %s2466_s7 = inlined_call_operand.vmem [shape: f32[8,1], index: 7, kind: input, shape index: {}]   ;;  %s2467_s8 = inlined_call_operand.vmem [shape: f32[8,72], index: 8, kind: input, shape index: {}]   ;;  %s2468_s9 = inlined_call_operand.vmem [shape: f32[8,1], index: 9, kind: input, shape index: {}]   ;;  %s2469_s10 = inlined_call_operand.vmem [shape: f32[8,72], index: 10, kind: input, shape index: {}]   ;;  %s2470_s11 = inlined_call_operand.vmem [shape: f32[8,1], index: 11, kind: input, shape index: {}]   ;;  %s2471_s12 = inlined_call_operand.vmem [shape: f32[8,1], index: 12, kind: input, shape index: {}]   ;;  %s2472_s13 = inlined_call_operand.<no memory space> [shape: f32[1,1], index: 13, kind: input, shape index: {}]   ;;  %s2473_s14 = inlined_call_operand.hbm [shape: f32[2,64,256], index: 14, kind: output, shape index: {}]  }
   0x1   :  { %v19_v0 = vstv %s2472_s13 }
   0x2   :  { %20 = vst [vmem:[#allocation2] sm:$0x1] %v19_v0 }
   0x3   :  { %21 = vsyncpa [#allocation4], 0 }
   0x4   :  { %23 = vsyncpa [#allocation4 + $0x1], 0 }
   0x5   :  { %24 = vsyncpa [#allocation5], 0 }
   0x6   :  { %26 = vsyncpa [#allocation5 + $0x1], 0  ;;  %s1890_s15 = smov 0   ;;  %s1892_s16 = smov 0  }
   0x7   :  { %s1894_s17 = smov 0   ;;  %s1896_s18 = smov 0  }
   0x8 LB: > { %2480 = sst [smem:[#allocation9_spill]] %s1783_s15  ;;  %s1911_s13 = sadd.s32 4294967295, %s1795_s18   ;;  %s1795_s18 = sphi %s1896_s18, %s2494_s18   ;;  %s1791_s17 = sphi %s1894_s17, %s2496_s17   ;;  %s1787_s16 = sphi %s1892_s16, %s2498_s16   ;;  %s1783_s15 = sphi %s1890_s15, %s2497_s15  }
   0x9   : > { %2481 = sst [smem:[#allocation10_spill]] %s1791_s17  ;;  %s1445_s19 = sadd.s32 4294967294, %s1795_s18  }
   0xa   : > { %s1915_s20 = sadd.s32 1, %s1795_s18   ;;  %s39_s21 = sadd.s32 1, %s1791_s17 }
   0xb   : > { %2482 = sst [smem:[#allocation11_spill]] %s1915_s20  ;;  %s36_s22 = ssub.s32 %s1795_s18, %s1915_s20 }
   0xc   : > { %p46_p0 = scmp.ne.s32.totalorder %s1791_s17, %s1787_s16  ;;  %p37_p1 = scmp.eq.s32.totalorder %s36_s22, 0 }
   0xd   : > { %p47_p2 = scmp.eq.s32.totalorder %s1795_s18, 0  ;;  %p52_p3 = scmp.ne.s32.totalorder %s1787_s16, %s1783_s15 }
   0xe   : > { %p53_p4 = scmp.eq.s32.totalorder %s1911_s13, 0  ;;  %p349_p7 = scmp.eq.s32.totalorder %s1911_s13, 1 }
   0xf   : > { %s1927_s23 = scalar_select %p37_p1, %s1791_s17, %s39_s21  }
  0x10   : > { %p1929_p5 = por %p47_p2, %p46_p0  ;;  %p1933_p6 = por %p53_p4, %p52_p3 }
  0x11   : > { %2483 = sst [smem:[#allocation12_spill]] %s1927_s23  ;;  %p355_p8 = scmp.eq.s32.totalorder %s1445_s19, 1 }
  0x12   : > { %p1598_p10 = scmp.lt.s32.totalorder %s1795_s18, 2  ;;  %p1940_p11 = por %p349_p7, %p46_p0 }
  0x13   : > { %p1944_p12 = por %p355_p8, %p52_p3  ;;  %s414_s28 = sand.u32 1, %s1791_s17  }
  0x14   : > { %s2486_s26 = scalar_select %p1940_p11, 1, 0 }
  0x15   : > { %s2487_s27 = scalar_select %p1944_p12, 1, 0 }
  0x16   : > { %s1473_s29 = sshll.u32 %s1795_s18, 11  ;;  %s1448_s30 = sshll.u32 %s414_s28, 7 }
  0x17   : > { %s1953_s23 = scalar_lea.hbm %s2459_s0, %s1473_s29  ;;  %s418_s19 = scalar_lea.vmem [#allocation3], %s1448_s30 }
  0x18   : > { %s425_s20 = sshll.u32 %s418_s19, 4  ;;  %p1957_p13 = pnand %p1598_p10, %p1929_p5  ;;  %s1961_s20 = int_to_ptr.vmem [resolvable:$true] %s425_s20 }
  0x19   : > { %s1963_s17 = scalar_lea.sflag [#allocation4], %s414_s28  ;;  %s1699_s21 = scalar_lea.hbm %s1953_s23, 2048 }
  0x1a   : > { %p1700_p0 = scmp.ne.s32.totalorder %s1953_s23, %s1699_s21  ;;  %p1701_p1 = pneg %p1957_p13 }
  0x1b   : > { %s1704_s30 = scalar_lea.hbm %s2459_s0, 4096  ;;  %p1705_p4 = scmp.lt.u32.totalorder %s1953_s23, %s2459_s0 }
  0x1c   : > { %p1702_p2 = pnand %p1701_p1, %p1700_p0  ;;  %p1706_p5 = scmp.lt.u32.totalorder %s1704_s30, %s1699_s21 }
  0x1d   : > { %p1708_p8 = scmp.lt.u32.totalorder %s1699_s21, %s1953_s23 }
  0x1e   : > { %p1703_p3 = pneg %p1702_p2  ;;  %p1707_p7 = por %p1706_p5, %p1705_p4 }
  0x20   : > { %p1709_p10 = por %p1708_p8, %p1707_p7 }
  0x22   : > { %p1710_p9 = pnand %p1709_p10, %p1703_p3 }
  0x24   : > { %1713 = shalt.err (!%p1710_p9)
}
  0x25   : > { %s1714_s28 = scalar_lea.vmem %s1961_s20, 2048  ;;  %s1797_s29 = smov [#allocation3]  }
  0x26   : > { %p1715_p0 = scmp.ne.s32.totalorder %s1961_s20, %s1714_s28  ;;  %s1719_s24 = sshll.u32 %s1797_s29, 4  ;;  %s1720_s24 = int_to_ptr.vmem [resolvable:$false] %s1719_s24 }
  0x27   : > { %s1721_s22 = scalar_lea.vmem %s1720_s24, 4096  ;;  %p1722_p11 = scmp.lt.s32.totalorder %s1961_s20, %s1720_s24 }
  0x28   : > { %p1717_p2 = pnand %p1715_p0, %p1701_p1  ;;  %p1723_p4 = scmp.lt.s32.totalorder %s1721_s22, %s1714_s28 }
  0x2a   : > { %p1718_p12 = pneg %p1717_p2  ;;  %p1724_p5 = por %p1723_p4, %p1722_p11 }
  0x2c   : > { %p1725_p7 = pnand %p1724_p5, %p1718_p12 }
  0x2e   : > { %1728 = shalt.err (!%p1725_p7)
}
  0x2f   : > { %s1798_s21 = smov 256   ;;  %s1799_s30 = smov 16  }
  0x30   : > { %1593 = dma.hbm_to_vmem [thread:$0]  (!%p1957_p13), %s1953_s23, 2048, %s1961_s20, %s1963_s17, %s1798_s21, %s1798_s21, %s1799_s30  }
  0x31   : > { %p1451_p9 = scmp.ge.s32.totalorder %s1795_s18, 1  ;;  %p433_p1 = scmp.lt.s32.totalorder %s1795_s18, 3 }
  0x33   : > { %p434_p3 = pnand %p1451_p9, %p433_p1 }
  0x34   : > { %s1994_s19 = sand.u32 (!%p434_p3), 1, %s1787_s16  }
  0x35   : > { %437 = sbr.rel (%p434_p3) target bundleno = 1499 (0x5db), region = 76  ;;  %s2479_s28 = sshll.u32 (!%p434_p3), %s1994_s19, 7 }
  0x36   : > { %s440_s29 = scalar_lea.sflag (!%p434_p3), [#allocation4], %s1994_s19  ;;  %s443_s24 = scalar_lea.vmem (!%p434_p3), [#allocation3], %s2479_s28 }
  0x3c   : > { %1774 = dma.done.wait (%p1933_p6), %s440_s29, 2048  }
  0x3d   : > { %1776 = vsyncadd (%p1933_p6), %s440_s29, 4294965248  ;;  %v2004_v1 = vld [vmem:[%s443_s24 + $0x20] sm:$0xff]  ;;  %v2006_v2 = vld [vmem:[%s443_s24 + $0x28] sm:$0xff]  ;;  %v1800_v25 = vmov 0.0|0.0   ;;  %vm1801_vm0 = vmmov 0   ;;  %v1802_v26 = vmov 0.0  }
  0x3e   : > { %v2008_v3 = vld [vmem:[%s443_s24] sm:$0xff]  ;;  %v510_v4 = vadd.f32 %v2006_v2, %v2004_v1  ;;  %v2012_v5 = vld [vmem:[%s443_s24 + $0x8] sm:$0xff]  ;;  %v2014_v6 = vld [vmem:[%s443_s24 + $0x30] sm:$0xff]  ;;  %1526 = vmatprep.subr.bf16.mxu0 %v1800_v25  ;;  %1509 = vmatprep.mubr.msk.f32.mxu0 %vm1801_vm0, %v1802_v26  ;;  %vm538_vm1 = vcmask 523264   ;;  %vm629_vm2 = vcmask 64512   ;;  %v1803_v50 = vmov 0  }
  0x3f   : > { %v2016_v7 = vld [vmem:[%s443_s24 + $0x38] sm:$0xff]  ;;  %v504_v8 = vadd.f32 %v2012_v5, %v2008_v3  ;;  %v2020_v9 = vld [vmem:[%s443_s24 + $0x10] sm:$0xff]  ;;  %v2032_v15 = vld [vmem:[%s443_s24 + $0x40] sm:$0xff]  ;;  %1645 = vset.pattern.permute.xlu0 %v1803_v50  ;;  %1646 = vset.pattern.permute.xlu1 %v1803_v50  ;;  %v1544_v61 = vpack.c.bf16 %v2014_v6, %v2004_v1  ;;  %s1804_s25 = smov 124   ;;  %s1805_s22 = smov 68   ;;  %vm970_vm8 = vcmask 588800  }
  0x40   : > { %v2022_v10 = vld [vmem:[%s443_s24 + $0x18] sm:$0xff]  ;;  %511 = vadd.xlane.f32.xlu1 %v510_v4  ;;  %v513_v11 = vadd.f32 %v2016_v7, %v2014_v6  ;;  %v2028_v13 = vld [vmem:[%s443_s24 + $0x50] sm:$0xff]  ;;  %v2034_v16 = vld [vmem:[%s443_s24 + $0x48] sm:$0xff]  ;;  %v1540_v57 = vpack.c.bf16 %v2020_v9, %v2008_v3  ;;  %v1542_v60 = vpack.c.bf16 %v2016_v7, %v2006_v2  ;;  %s1806_s29 = smov 64   ;;  %s1808_s15 = smov 4  }
  0x41   : > { %505 = vadd.xlane.f32.xlu0 %v504_v8  ;;  %v507_v12 = vadd.f32 %v2022_v10, %v2020_v9  ;;  %v2030_v14 = vld [vmem:[%s443_s24 + $0x58] sm:$0xff]  ;;  %v516_v18 = vadd.f32 %v2034_v16, %v2032_v15  ;;  %v2040_v19 = vld [vmem:[%s443_s24 + $0x70] sm:$0xff]  ;;  %v2044_v21 = vld [vmem:[%s443_s24 + $0x60] sm:$0xff]  ;;  %v1538_v56 = vpack.c.bf16 %v2022_v10, %v2012_v5  ;;  %v1548_v4 = vpack.c.bf16 %v2028_v13, %v2032_v15  ;;  %s2489_s20 = sshll.u32 %s1994_s19, 7  ;;  %s1474_s21 = sshll.u32 %s1911_s13, 11 }
  0x42   : > { %v519_v17 = vadd.f32 %v2030_v14, %v2028_v13  ;;  %v2042_v20 = vld [vmem:[%s443_s24 + $0x78] sm:$0xff]  ;;  %v2046_v22 = vld [vmem:[%s443_s24 + $0x68] sm:$0xff]  ;;  %v1546_v0 = vpack.c.bf16 %v2030_v14, %v2034_v16  ;;  %s1807_s24 = smov 60   ;;  %s2377_s23 = scalar_lea.vmem [#allocation6], %s2489_s20 }
  0x43   : > { %v525_v23 = vadd.f32 %v2042_v20, %v2040_v19  ;;  %v522_v24 = vadd.f32 %v2046_v22, %v2044_v21  ;;  %v536_v47 = vld [vmem:[%s2461_s2] sm:$0xff]  ;;  %v614_v58 = vld [vmem:[%s2463_s4 + $0x8] sm:$0xff]  ;;  %v615_v59 = vld [vmem:[%s2463_s4 + $0x10] sm:$0xff]  ;;  %s2409_s13 = scalar_lea.hbm %s2473_s14, %s1474_s21  ;;  %s1359_s30 = scalar_lea.sflag [#allocation5], %s1994_s19 }
  0x44   : > { %514 = vadd.xlane.f32.xlu1 %v513_v11  ;;  %v613_v48 = vld [vmem:[%s2463_s4] sm:$0xff]  ;;  %v616_v62 = vld [vmem:[%s2463_s4 + $0x18] sm:$0xff]  ;;  %v618_v8 = vld [vmem:[%s2463_s4 + $0x28] sm:$0xff]  ;;  %p2490_p11 = scmp.ne.s32.totalorder %s2486_s26, 0  ;;  %s1809_s28 = smov [#allocation6]  }
  0x45   : > { %508 = vadd.xlane.f32.xlu0 %v507_v12  ;;  %1514 = vmatprep.mubr.msk.f32.mxu1 %vm629_vm2, %v613_v48  ;;  %v764_v49 = vld [vmem:[%s2466_s7] sm:$0xff]  ;;  %v619_v11 = vld [vmem:[%s2463_s4 + $0x30] sm:$0xff]  ;;  %v1550_v12 = vpack.c.bf16 %v2042_v20, %v2046_v22  ;;  %v760_v50 = vld [vmem:[%s2460_s1 + $0x8] sm:$0xff] }
  0x46   : > { %v537_v51 = vld [vmem:[%s2462_s3] sm:$0xff] }
  0x47   : > { %v617_v63 = vld [vmem:[%s2463_s4 + $0x20] sm:$0xff] }
  0x48   : > { %520 = vadd.xlane.f32.xlu1 %v519_v17  ;;  %v1552_v17 = vpack.c.bf16 %v2040_v19, %v2044_v21  ;;  %v759_v48 = vld [vmem:[%s2460_s1] sm:$0xff] }
  0x49   : > { %517 = vadd.xlane.f32.xlu0 %v516_v18  ;;  %v620_v18 = vld [vmem:[%s2463_s4 + $0x38] sm:$0xff] }
  0x4c   : > { %526 = vadd.xlane.f32.xlu1 %v525_v23  ;;  %v763_v23 = vld [vmem:[%s2465_s6] sm:$0xff] }
  0x4d   : > { %523 = vadd.xlane.f32.xlu0 %v522_v24 }
  0x63   : > { %767 = vperm.xlu0 %1645, %v764_v49  }
  0xcd   : > { %v512_v27 = vpop.xlane.xlu1 %511 }
  0xce   : > { %v506_v28 = vpop.xlane.xlu0 %505  ;;  %v530_v33 = vmul.f32 0.00390625, %v512_v27 }
  0xcf   : > { %v528_v31 = vmul.f32 0.00390625, %v506_v28 }
  0xd1   : > { %v515_v29 = vpop.xlane.xlu1 %514 }
  0xd2   : > { %v509_v30 = vpop.xlane.xlu0 %508  ;;  %v531_v34 = vmul.f32 0.00390625, %v515_v29 }
  0xd3   : > { %v529_v32 = vmul.f32 0.00390625, %v509_v30 }
  0xd4   : > { %v1530_v40 = vpack.c.bf16 %v531_v34, %v530_v33 }
  0xd5   : > { %v1527_v35 = vpack.c.bf16 %v529_v32, %v528_v31  ;;  %v521_v36 = vpop.xlane.xlu1 %520 }
  0xd6   : > { %v518_v37 = vpop.xlane.xlu0 %517  ;;  %v533_v38 = vmul.f32 0.00390625, %v521_v36 }
  0xd7   : > { %1528 = vmatpush3.bf16.msra.mxu0 %v1527_v35  ;;  %v532_v39 = vmul.f32 0.00390625, %v518_v37  ;;  %v847_v37 = vld [vmem:[%s2468_s9] sm:$0xff] }
  0xd8   : > { %1529 = vmatprep.subr.bf16.mxu0 %v1800_v25 }
  0xd9   : > { %v527_v41 = vpop.xlane.xlu1 %526  ;;  %v1533_v43 = vpack.c.bf16 %v533_v38, %v532_v39 }
  0xda   : > { %v524_v42 = vpop.xlane.xlu0 %523  ;;  %v535_v44 = vmul.f32 0.00390625, %v527_v41 }
  0xdb   : > { %1531 = vmatpush3.bf16.msra.mxu0 %v1530_v40  ;;  %v534_v45 = vmul.f32 0.00390625, %v524_v42  ;;  %v852_v42 = vlaneseq }
  0xdc   : > { %1532 = vmatprep.subr.bf16.mxu0 %v1800_v25 }
  0xdd   : > { %v1536_v46 = vpack.c.bf16 %v535_v44, %v534_v45  ;;  %v2161_v44 = vshrl.u32 %v852_v42, 7 }
  0xdf   : > { %1534 = vmatpush3.bf16.msra.mxu0 %v1533_v43  ;;  %v876_v49 = vsub.s32 1, %v2161_v44 }
  0xe0   : > { %1535 = vmatprep.subr.bf16.mxu0 %v1800_v25 }
  0xe2   : > { %v768_v33 = vpop.permute.xlu0 %767 }
  0xe3   : > { %1537 = vmatpush3.bf16.msra.mxu0 %v1536_v46  ;;  %v2163_v46 = vand.u32 127, %v852_v42 }
  0xe5   : > { %vm854_vm3 = vcmp.lt.s32.totalorder %v2163_v46, 68  ;;  %vm871_vm4 = vcmp.lt.s32.totalorder %v2163_v46, 64  ;;  %vm888_vm5 = vcmp.lt.s32.totalorder %v2163_v46, 60  ;;  %vm905_vm6 = vcmp.lt.s32.totalorder %v2163_v46, 4 }
  0xe6   : > { %1510 = vmatmul.mubr.msk.f32.vlgmr.msra.gmra.mrb[0].mxu0 %vm538_vm1, %v536_v47  ;;  %v2166_v47 = vsub.s32 0, %v2161_v44  ;;  %vm922_vm7 = vcmp.lt.s32.totalorder %v2163_v46, 124 }
  0xe7   : > { %1038 = vmatprep.mubr.f32.mxu0 %v1802_v26 }
 0x1b9   : > { %v608_v52 = vpop.f32.mrb[0].mxu0 }
 0x1ba   : > { %v609_v53 = vadd.f32 %v608_v52, %v537_v51  ;;  %v1511_v54 = vpop.f32.mrb[1].mxu0  ;;  %v2177_v52 = vrot.slane %v759_v48, %v2166_v47 }
 0x1bb   : > { %v2183_v54 = vrot.slane %v759_v48, %v876_v49 }
 0x1bc   : > { %v612_v55 = vmax.f32 %v609_v53, 0.0  ;;  %v2180_v53 = vrot.slane %v760_v50, %v2166_v47 }
 0x1be   : > { %1512 = vmatprep.subr.mxu1 %v612_v55 }
 0x1bf   : > { %1513 = vmatpush3.msra.mxu1 %v612_v55  ;;  %v2185_v55 = vrot.slane %v760_v50, %v876_v49 }
 0x1c0   : > { %1515 = vmatmul.mubr.msk.f32.vlgmr.msra.gmra.mrb[0].mxu1 %vm629_vm2, %v614_v58  ;;  %1539 = vmatprep.subr.bf16.mxu1 %v1538_v56 }
 0x1c1   : > { %1541 = vmatpush1.bf16.msra.mxu1 %v1540_v57  ;;  %1517 = vmatprep.mubr.msk.f32.mxu1 %vm629_vm2, %v615_v59 }
 0x1c2   : > { %1543 = vmatprep.subr.bf16.mxu1 %v1542_v60 }
 0x1c4   : > { %1518 = vmatmul.mubr.msk.f32.gmra.mrb[2].mxu1 %vm629_vm2, %v616_v62  ;;  %v910_v62 = vsub.s32 3, %v2161_v44 }
 0x1c5   : > { %1545 = vmatpush1.bf16.msra.mxu1 %v1544_v61  ;;  %1520 = vmatprep.mubr.msk.f32.mxu1 %vm629_vm2, %v617_v63  ;;  %v893_v61 = vsub.s32 2, %v2161_v44 }
 0x1c6   : > { %1547 = vmatprep.subr.bf16.mxu1 %v1546_v0 }
 0x1c8   : > { %1521 = vmatmul.mubr.msk.f32.gmra.mrb[4].mxu1 %vm629_vm2, %v618_v8 }
 0x1c9   : > { %1549 = vmatpush1.bf16.msra.mxu1 %v1548_v4  ;;  %1523 = vmatprep.mubr.msk.f32.mxu1 %vm629_vm2, %v619_v11  ;;  %v947_v11 = vsub.s32 7, %v2161_v44 }
 0x1ca   : > { %1551 = vmatprep.subr.bf16.mxu1 %v1550_v12 }
 0x1cc   : > { %1524 = vmatmul.mubr.msk.f32.gmra.mrb[6].mxu1 %vm629_vm2, %v620_v18 }
 0x1cd   : > { %1553 = vmatpush1.bf16.msra.mxu1 %v1552_v17  ;;  %837 = vmatprep.mubr.f32.mxu1 %v1802_v26 }
 0x1d0   : > { %1463 = vmatmul.mubr.msk.f32.vlgmr.msra.gmra.mrb[8].mxu1 %vm538_vm1, %v763_v23  ;;  %v2203_v23 = vrot.slane %v759_v48, %v893_v61 }
 0x1d1   : > { %1167 = vmatprep.mubr.f32.mxu1 %v1802_v26 }
 0x293   : > { %v2118_v24 = vpop.f32.mrb[0].mxu1 }
 0x294   : > { %v2120_v25 = vpop.f32.mrb[1].mxu1 }
 0x297   : > { %v2122_v27 = vpop.f32.mrb[2].mxu1 }
 0x298   : > { %v2124_v28 = vpop.f32.mrb[3].mxu1 }
 0x29b   : > { %v2126_v29 = vpop.f32.mrb[4].mxu1 }
 0x29c   : > { %v2128_v30 = vpop.f32.mrb[5].mxu1 }
 0x29f   : > { %v2130_v31 = vpop.f32.mrb[6].mxu1 }
 0x2a0   : > { %v2132_v32 = vpop.f32.mrb[7].mxu1 }
 0x2a3   : > { %v839_v34 = vpop.f32.mrb[8].mxu1 }
 0x2a4   : > { %v840_v35 = vadd.f32 %v839_v34, %v768_v33  ;;  %v841_v26 = vpop.f32.mrb[9].mxu1  ;;  %v2206_v34 = vrot.slane %v760_v50, %v893_v61 }
 0x2a5   : > { %v842_v38 = vadd.f32 %v841_v26, %v768_v33  ;;  %v927_v33 = vsub.s32 5, %v2161_v44  ;;  %v2211_v26 = vrot.slane %v760_v50, %v910_v62 }
 0x2a6   : > { %v2134_v36 = vmax.f32 %v840_v35, 0.0  ;;  %v2209_v35 = vrot.slane %v759_v48, %v910_v62 }
 0x2a7   : > { %v2149_v39 = vmax.f32 %v842_v38, 0.0  ;;  %v2227_v61 = vrot.slane %v760_v50, %v927_v33 }
 0x2a8   : > { %918 = vrot.lane.b32.xlu0 %v2134_v36, %s1804_s25  ;;  %848 = vrot.lane.b32.xlu1 %v2134_v36, %s1805_s22 }
 0x2ac   : > { %967 = vperm.xlu0 %1645, %v847_v37   ;;  %867 = vrot.lane.b32.xlu1 %v2134_v36, %s1806_s29 }
 0x2b0   : > { %884 = vrot.lane.b32.xlu1 %v2134_v36, %s1807_s24 }
 0x2b4   : > { %901 = vrot.lane.b32.xlu1 %v2134_v36, %s1808_s15 }
 0x2b8   : > { %850 = vrot.lane.b32.xlu1 %v2149_v39, %s1805_s22 }
 0x2bc   : > { %869 = vrot.lane.b32.xlu1 %v2149_v39, %s1806_s29 }
 0x2c0   : > { %886 = vrot.lane.b32.xlu1 %v2149_v39, %s1807_s24 }
 0x2c4   : > { %903 = vrot.lane.b32.xlu1 %v2149_v39, %s1808_s15 }
 0x2c8   : > { %920 = vrot.lane.b32.xlu1 %v2149_v39, %s1804_s25 }
 0x31a   : > { %v849_v40 = vpop.permute.xlu1 %848 }
 0x31e   : > { %v868_v41 = vpop.permute.xlu1 %867 }
 0x322   : > { %v885_v43 = vpop.permute.xlu1 %884 }
 0x326   : > { %v902_v45 = vpop.permute.xlu1 %901 }
 0x32a   : > { %v851_v51 = vpop.permute.xlu1 %850 }
 0x32b   : > { %v855_v56 = vsel %vm854_vm3, %v849_v40, %v851_v51  ;;  %v856_v57 = vsel %vm854_vm3, %v851_v51, %v849_v40  ;;  %v937_v40 = vsub.s32 6, %v2161_v44 }
 0x32c   : > { %v865_v63 = vmul.f32 %v2177_v52, %v856_v57  ;;  %v866_v0 = vmul.f32 %v2180_v53, %v855_v56 }
 0x32e   : > { %v870_v58 = vpop.permute.xlu1 %869 }
 0x32f   : > { %v872_v59 = vsel %vm871_vm4, %v868_v41, %v870_v58  ;;  %v873_v60 = vsel %vm871_vm4, %v870_v58, %v868_v41  ;;  %v2218_v41 = vrot.slane %v760_v50, %v947_v11  ;;  %v2225_v58 = vrot.slane %v759_v48, %v927_v33 }
 0x330   : > { %v882_v4 = vmul.f32 %v2183_v54, %v873_v60  ;;  %v883_v8 = vmul.f32 %v2185_v55, %v872_v59 }
 0x332   : > { %v1556_v12 = vpack.c.bf16 %v882_v4, %v865_v63  ;;  %v887_v17 = vpop.permute.xlu1 %886  ;;  %v1554_v18 = vpack.c.bf16 %v883_v8, %v866_v0  ;;  %v919_v0 = vpop.permute.xlu0 %918  ;;  %v2233_v4 = vrot.slane %v760_v50, %v937_v40  ;;  %v2244_v50 = vrot.slane %v759_v48, %v937_v40 }
 0x333   : > { %v889_v37 = vsel %vm888_vm5, %v885_v43, %v887_v17  ;;  %v890_v38 = vsel %vm888_vm5, %v887_v17, %v885_v43 }
 0x334   : > { %1555 = vmatprep.subr.bf16.mxu0 %v1554_v18  ;;  %v899_v43 = vmul.f32 %v2203_v23, %v890_v38  ;;  %v900_v62 = vmul.f32 %v2206_v34, %v889_v37  ;;  %v2235_v18 = vrot.slane %v759_v48, %v947_v11 }
 0x335   : > { %1557 = vmatpush1.bf16.msra.mxu0 %v1556_v12 }
 0x336   : > { %v904_v42 = vpop.permute.xlu1 %903 }
 0x337   : > { %v906_v49 = vsel %vm905_vm6, %v902_v45, %v904_v42  ;;  %v907_v51 = vsel %vm905_vm6, %v904_v42, %v902_v45  ;;  %v954_v42 = vmul.f32 %v2218_v41, %v873_v60  ;;  %v943_v60 = vmul.f32 %v2244_v50, %v855_v56  ;;  %v846_v56 = vld [vmem:[%s2467_s8] sm:$0xff] }
 0x338   : > { %v916_v44 = vmul.f32 %v2209_v35, %v907_v51  ;;  %v917_v63 = vmul.f32 %v2211_v26, %v906_v49 }
 0x33a   : > { %v1560_v8 = vpack.c.bf16 %v916_v44, %v899_v43  ;;  %v921_v12 = vpop.permute.xlu1 %920  ;;  %v1558_v17 = vpack.c.bf16 %v917_v63, %v900_v62  ;;  %v944_v43 = vmul.f32 %v2233_v4, %v856_v57  ;;  %v953_v44 = vmul.f32 %v2235_v18, %v872_v59  ;;  %v968_v59 = vpop.permute.xlu0 %967 }
 0x33b   : > { %v923_v45 = vsel %vm922_vm7, %v919_v0, %v921_v12  ;;  %v924_v33 = vsel %vm922_vm7, %v921_v12, %v919_v0  ;;  %v2254_v0 = vld [vmem:[%s2460_s1 + $0x18] ss:$0 sm:$0xff] }
 0x33c   : > { %v933_v51 = vmul.f32 %v2225_v58, %v923_v45  ;;  %v934_v49 = vmul.f32 %v2227_v61, %v924_v33  ;;  %1559 = vmatprep.subr.bf16.mxu0 %v1558_v17  ;;  %v1566_v63 = vpack.c.bf16 %v954_v42, %v944_v43  ;;  %v1568_v48 = vpack.c.bf16 %v953_v44, %v943_v60  ;;  %v622_v33 = vld [vmem:[%s2464_s5 + $0x8] sm:$0xff] }
 0x33d   : > { %1561 = vmatpush1.bf16.msra.mxu0 %v1560_v8 }
 0x33e   : > { %v1564_v11 = vpack.c.bf16 %v933_v51, %v2134_v36  ;;  %v1562_v62 = vpack.c.bf16 %v934_v49, %v2149_v39  ;;  %v2259_v36 = vld [vmem:[%s2460_s1 + $0x10] ss:$0 sm:$0xff]  ;;  %v964_v39 = vmul.f32 %v2254_v0, %v890_v38  ;;  %v621_v38 = vld [vmem:[%s2464_s5] sm:$0xff]  ;;  %v726_v49 = vadd.f32 %v2118_v24, %v622_v33 }
 0x33f   : > { %v963_v57 = vmul.f32 %v2259_v36, %v889_v37  ;;  %v721_v42 = vadd.f32 %v2120_v25, %v621_v38  ;;  %v623_v51 = vld [vmem:[%s2464_s5 + $0x10] sm:$0xff]  ;;  %v625_v25 = vld [vmem:[%s2464_s5 + $0x20] sm:$0xff] }
 0x340   : > { %1563 = vmatprep.subr.bf16.mxu0 %v1562_v62  ;;  %v731_v62 = vadd.f32 %v2124_v28, %v623_v51  ;;  %v1209_v44 = vsub.f32 0.0, %v726_v49  ;;  %v741_v28 = vadd.f32 %v2128_v30, %v625_v25  ;;  %v628_v30 = vld [vmem:[%s2464_s5 + $0x38] sm:$0xff]  ;;  %v1048_v38 = vld [vmem:[%s2470_s11] sm:$0xff] }
 0x341   : > { %1565 = vmatpush1.bf16.msra.mxu0 %v1564_v11  ;;  %v1208_v43 = vsub.f32 0.0, %v721_v42  ;;  %v624_v11 = vld [vmem:[%s2464_s5 + $0x18] sm:$0xff] }
 0x342   : > { %1567 = vmatprep.subr.bf16.mxu0 %v1566_v63  ;;  %v736_v24 = vadd.f32 %v2122_v27, %v624_v11  ;;  %v1210_v60 = vsub.f32 0.0, %v731_v62 }
 0x343   : > { %v1216_v63 = vmul.f32 1.442695, %v1208_v43 }
 0x344   : > { %v1211_v27 = vsub.f32 0.0, %v736_v24 }
 0x345   : > { %1569 = vmatpush1.bf16.msra.mxu0 %v1568_v48  ;;  %v626_v48 = vld [vmem:[%s2464_s5 + $0x28] sm:$0xff]  ;;  %1647 = vpow2.f32 %v1216_v63 }
 0x346   : > { %990 = vmatprep.subr.mxu0 %v964_v39  ;;  %v627_v39 = vld [vmem:[%s2464_s5 + $0x30] sm:$0xff] }
 0x349   : > { %991 = vmatpush1.msra.mxu0 %v963_v57  ;;  %v1218_v57 = vmul.f32 1.442695, %v1209_v44 }
 0x34a   : > { %1466 = vmatmul.mubr.msk.f32.vlgmr.msra.gmra.mrb[2].mxu0 %vm970_vm8, %v846_v56  ;;  %v746_v56 = vadd.f32 %v2126_v29, %v626_v48  ;;  %v756_v29 = vadd.f32 %v2130_v31, %v628_v30  ;;  %v1196_v31 = vld [vmem:[#allocation2] sm:$0x1] }
 0x34b   : > { %1649 = vpow2.f32 %v1218_v57 }
 0x34c   : > { %v1215_v49 = vsub.f32 0.0, %v756_v29 }
 0x34e   : > { %v1230_v62 = vmul.f32 1.442695, %v1215_v49 }
 0x34f   : > { %v1648_v11 = vpop.eup %1647 }
 0x355   : > { %v1650_v25 = vpop.eup %1649 }
 0x41d   : > { %v1040_v40 = vpop.f32.mrb[2].mxu0 }
 0x41e   : > { %v1041_v8 = vadd.f32 %v1040_v40, %v968_v59  ;;  %v1042_v12 = vpop.f32.mrb[3].mxu0  ;;  %v1212_v40 = vsub.f32 0.0, %v741_v28 }
 0x41f   : > { %v1043_v17 = vadd.f32 %v1042_v12, %v968_v59  ;;  %v1220_v59 = vmul.f32 1.442695, %v1210_v60  ;;  %v1222_v12 = vmul.f32 1.442695, %v1211_v27 }
 0x420   : > { %v2267_v45 = vmax.f32 %v1041_v8, 0.0  ;;  %v751_v8 = vadd.f32 %v2132_v32, %v627_v39  ;;  %v1224_v33 = vmul.f32 1.442695, %v1212_v40  ;;  %v1176_v32 = vld [vmem:[%s2471_s12] sm:$0xff] }
 0x421   : > { %v2272_v37 = vmax.f32 %v1043_v17, 0.0  ;;  %v1213_v17 = vsub.f32 0.0, %v746_v56  ;;  %1651 = vpow2.f32 %v1220_v59 }
 0x422   : > { %1049 = vrot.lane.b32.xlu1 %v2267_v45, %s1805_s22  ;;  %v1214_v42 = vsub.f32 0.0, %v751_v8  ;;  %1653 = vpow2.f32 %v1222_v12 }
 0x423   : > { %1051 = vrot.lane.b32.xlu0 %v2272_v37, %s1805_s22  ;;  %v1226_v51 = vmul.f32 1.442695, %v1213_v17  ;;  %1655 = vpow2.f32 %v1224_v33 }
 0x424   : > { %v1228_v43 = vmul.f32 1.442695, %v1214_v42 }
 0x425   : > { %1657 = vpow2.f32 %v1226_v51 }
 0x426   : > { %1057 = vrot.lane.b32.xlu1 %v2267_v45, %s1806_s29  ;;  %1659 = vpow2.f32 %v1228_v43 }
 0x427   : > { %1059 = vrot.lane.b32.xlu0 %v2272_v37, %s1806_s29  ;;  %1661 = vpow2.f32 %v1230_v62 }
 0x42a   : > { %1065 = vrot.lane.b32.xlu1 %v2267_v45, %s1807_s24 }
 0x42b   : > { %1067 = vrot.lane.b32.xlu0 %v2272_v37, %s1807_s24  ;;  %v1652_v44 = vpop.eup %1651  ;;  %s1372_s24 = sshll.u32 %s2377_s23, 4  ;;  %s2411_s24 = int_to_ptr.vmem [resolvable:$true] %s1372_s24 }
 0x42c   : > { %v1654_v24 = vpop.eup %1653  ;;  %s1729_s17 = scalar_lea.vmem %s2411_s24, 2048 }
 0x42d   : > { %v1656_v63 = vpop.eup %1655  ;;  %p1730_p6 = scmp.ne.s32.totalorder %s2411_s24, %s1729_s17 }
 0x42e   : > { %1073 = vrot.lane.b32.xlu1 %v2267_v45, %s1808_s15 }
 0x42f   : > { %1075 = vrot.lane.b32.xlu0 %v2272_v37, %s1808_s15  ;;  %v1658_v60 = vpop.eup %1657  ;;  %p1731_p12 = pnand %p1730_p6, %p2490_p11 }
 0x430   : > { %v1660_v48 = vpop.eup %1659 }
 0x431   : > { %v1662_v28 = vpop.eup %1661  ;;  %p1732_p13 = pneg %p1731_p12 }
 0x432   : > { %1081 = vrot.lane.b32.xlu1 %v2267_v45, %s1804_s25 }
 0x433   : > { %1083 = vrot.lane.b32.xlu0 %v2272_v37, %s1804_s25  ;;  %s1733_s25 = sshll.u32 %s1809_s28, 4  ;;  %s1734_s25 = int_to_ptr.vmem [resolvable:$false] %s1733_s25 }
 0x434   : > { %s1735_s29 = scalar_lea.vmem %s1734_s25, 4096  ;;  %p1736_p8 = scmp.lt.s32.totalorder %s2411_s24, %s1734_s25 }
 0x435   : > { %p1737_p10 = scmp.lt.s32.totalorder %s1735_s29, %s1729_s17 }
 0x436   : > { %1097 = vperm.xlu1 %1646, %v1048_v38  }
 0x437   : > { %1179 = vperm.xlu0 %1645, %v1176_v32   ;;  %p1738_p0 = por %p1737_p10, %p1736_p8 }
 0x439   : > { %p1739_p2 = pnand %p1738_p0, %p1732_p13 }
 0x43a   : > { %1199 = vperm.xlu1 %1646, %v1196_v31  }
 0x43b   : > { %1240 = vperm.xlu0 %1645, %v1648_v11  }
 0x43e   : > { %1245 = vperm.xlu1 %1646, %v1650_v25  }
 0x43f   : > { %1250 = vperm.xlu0 %1645, %v1652_v44  }
 0x442   : > { %1255 = vperm.xlu1 %1646, %v1654_v24  }
 0x443   : > { %1260 = vperm.xlu0 %1645, %v1656_v63  }
 0x446   : > { %1265 = vperm.xlu1 %1646, %v1658_v60  }
 0x447   : > { %1270 = vperm.xlu0 %1645, %v1660_v48  }
 0x44a   : > { %1275 = vperm.xlu1 %1646, %v1662_v28  }
 0x494   : > { %v1050_v39 = vpop.permute.xlu1 %1049 }
 0x495   : > { %v1052_v57 = vpop.permute.xlu0 %1051 }
 0x496   : > { %v1053_v27 = vsel %vm854_vm3, %v1050_v39, %v1052_v57  ;;  %v1054_v56 = vsel %vm854_vm3, %v1052_v57, %v1050_v39 }
 0x497   : > { %v1055_v12 = vmul.f32 %v1054_v56, %v2177_v52  ;;  %v1056_v17 = vmul.f32 %v1053_v27, %v2180_v53  ;;  %v1089_v46 = vmul.f32 %v1053_v27, %v2244_v50 }
 0x498   : > { %v1058_v59 = vpop.permute.xlu1 %1057 }
 0x499   : > { %v1060_v40 = vpop.permute.xlu0 %1059 }
 0x49a   : > { %v1061_v30 = vsel %vm871_vm4, %v1058_v59, %v1060_v40  ;;  %v1062_v8 = vsel %vm871_vm4, %v1060_v40, %v1058_v59 }
 0x49b   : > { %v1063_v29 = vmul.f32 %v1062_v8, %v2183_v54  ;;  %v1064_v38 = vmul.f32 %v1061_v30, %v2185_v55  ;;  %v1092_v39 = vmul.f32 %v1062_v8, %v2218_v41  ;;  %v1091_v59 = vmul.f32 %v1061_v30, %v2235_v18 }
 0x49c   : > { %v1066_v33 = vpop.permute.xlu1 %1065 }
 0x49d   : > { %v1572_v42 = vpack.c.bf16 %v1063_v29, %v1055_v12  ;;  %v1068_v32 = vpop.permute.xlu0 %1067  ;;  %v1570_v51 = vpack.c.bf16 %v1064_v38, %v1056_v17  ;;  %v1584_v41 = vpack.c.bf16 %v1091_v59, %v1089_v46 }
 0x49e   : > { %v1069_v49 = vsel %vm888_vm5, %v1066_v33, %v1068_v32  ;;  %v1070_v31 = vsel %vm888_vm5, %v1068_v32, %v1066_v33 }
 0x49f   : > { %1571 = vmatprep.subr.bf16.mxu1 %v1570_v51  ;;  %v1071_v55 = vmul.f32 %v1070_v31, %v2203_v23  ;;  %v1072_v11 = vmul.f32 %v1069_v49, %v2206_v34 }
 0x4a0   : > { %1573 = vmatpush1.bf16.msra.mxu1 %v1572_v42  ;;  %v1074_v43 = vpop.permute.xlu1 %1073 }
 0x4a1   : > { %v1076_v52 = vpop.permute.xlu0 %1075 }
 0x4a2   : > { %v1077_v53 = vsel %vm905_vm6, %v1074_v43, %v1076_v52  ;;  %v1078_v54 = vsel %vm905_vm6, %v1076_v52, %v1074_v43 }
 0x4a3   : > { %v1079_v62 = vmul.f32 %v1078_v54, %v2209_v35  ;;  %v1080_v25 = vmul.f32 %v1077_v53, %v2211_v26  ;;  %v1090_v35 = vmul.f32 %v1054_v56, %v2233_v4  ;;  %v1047_v4 = vld [vmem:[%s2469_s10] sm:$0xff] }
 0x4a4   : > { %v1082_v44 = vpop.permute.xlu1 %1081 }
 0x4a5   : > { %v1576_v24 = vpack.c.bf16 %v1079_v62, %v1071_v55  ;;  %v1084_v63 = vpop.permute.xlu0 %1083  ;;  %v1574_v60 = vpack.c.bf16 %v1080_v25, %v1072_v11  ;;  %v1582_v40 = vpack.c.bf16 %v1092_v39, %v1090_v35 }
 0x4a6   : > { %v1085_v48 = vsel %vm922_vm7, %v1082_v44, %v1084_v63  ;;  %v1086_v28 = vsel %vm922_vm7, %v1084_v63, %v1082_v44 }
 0x4a7   : > { %v1087_v23 = vmul.f32 %v1085_v48, %v2225_v58  ;;  %v1088_v34 = vmul.f32 %v1086_v28, %v2227_v61  ;;  %1575 = vmatprep.subr.bf16.mxu1 %v1574_v60  ;;  %v1094_v58 = vmul.f32 %v2254_v0, %v1070_v31  ;;  %v1093_v61 = vmul.f32 %v2259_v36, %v1069_v49 }
 0x4a8   : > { %1577 = vmatpush1.bf16.msra.mxu1 %v1576_v24 }
 0x4a9   : > { %v1580_v26 = vpack.c.bf16 %v1087_v23, %v2267_v45  ;;  %v1578_v57 = vpack.c.bf16 %v1088_v34, %v2272_v37 }
 0x4ab   : > { %1579 = vmatprep.subr.bf16.mxu1 %v1578_v57 }
 0x4ac   : > { %1581 = vmatpush1.bf16.msra.mxu1 %v1580_v26 }
 0x4ad   : > { %1583 = vmatprep.subr.bf16.mxu1 %v1582_v40 }
 0x4b0   : > { %1585 = vmatpush1.bf16.msra.mxu1 %v1584_v41 }
 0x4b1   : > { %1119 = vmatprep.subr.mxu1 %v1094_v58 }
 0x4b4   : > { %1120 = vmatpush1.msra.mxu1 %v1093_v61 }
 0x4b5   : > { %1467 = vmatmul.mubr.msk.f32.vlgmr.msra.gmra.mrb[10].mxu1 %vm970_vm8, %v1047_v4  ;;  %v1098_v18 = vpop.permute.xlu1 %1097 }
 0x4b6   : > { %v1180_v30 = vpop.permute.xlu0 %1179 }
 0x4b9   : > { %v1200_v31 = vpop.permute.xlu1 %1199 }
 0x4ba   : > { %v1205_v52 = vrot.slane %v1200_v31, %v2166_v47  ;;  %v1241_v63 = vpop.permute.xlu0 %1240 }
 0x4bd   : > { %v1246_v60 = vpop.permute.xlu1 %1245 }
 0x4be   : > { %v1251_v28 = vpop.permute.xlu0 %1250 }
 0x4c1   : > { %v1256_v34 = vpop.permute.xlu1 %1255 }
 0x4c2   : > { %v1261_v40 = vpop.permute.xlu0 %1260 }
 0x4c5   : > { %v1266_v4 = vpop.permute.xlu1 %1265 }
 0x588   : > { %v1169_v45 = vpop.f32.mrb[10].mxu1 }
 0x589   : > { %v1170_v37 = vadd.f32 %v1169_v45, %v1098_v18  ;;  %v1171_v50 = vpop.f32.mrb[11].mxu1 }
 0x58a   : > { %v1172_v27 = vadd.f32 %v1171_v50, %v1098_v18 }
 0x58b   : > { %v1174_v56 = vmax.f32 %v1170_v37, 0.0 }
 0x58c   : > { %v1175_v8 = vmax.f32 %v1172_v27, 0.0 }
 0x58d   : > { %v1182_v0 = vmul.f32 %v1180_v30, %v1174_v56 }
 0x58e   : > { %v1183_v12 = vmul.f32 %v1180_v30, %v1175_v8 }
 0x58f   : > { %v1184_v17 = vrot.slane %v1182_v0, 4 }
 0x590   : > { %v1190_v29 = vrot.slane %v1183_v12, 4 }
 0x591   : > { %v1185_v36 = vadd.f32 %v1184_v17, %v1182_v0  ;;  %v1271_v0 = vpop.permute.xlu0 %1270 }
 0x592   : > { %v1191_v38 = vadd.f32 %v1190_v29, %v1183_v12 }
 0x593   : > { %v1186_v33 = vrot.slane %v1185_v36, 2 }
 0x594   : > { %v1192_v42 = vrot.slane %v1191_v38, 2 }
 0x595   : > { %v1187_v32 = vadd.f32 %v1186_v33, %v1185_v36 }
 0x596   : > { %v1193_v51 = vadd.f32 %v1192_v42, %v1191_v38  ;;  %v1276_v38 = vpop.permute.xlu1 %1275 }
 0x597   : > { %v1188_v49 = vrot.slane %v1187_v32, 1 }
 0x598   : > { %v1194_v43 = vrot.slane %v1193_v51, 1 }
 0x599   : > { %v1189_v53 = vadd.f32 %v1188_v49, %v1187_v32 }
 0x59a   : > { %v1195_v54 = vadd.f32 %v1194_v43, %v1193_v51 }
 0x59b   : > { %v1206_v55 = vadd.f32 %v1205_v52, %v1189_v53 }
 0x59c   : > { %v1207_v11 = vadd.f32 %v1205_v52, %v1195_v54 }
 0x59d   : > { %v1232_v62 = vsub.f32 0.0, %v1206_v55 }
 0x59e   : > { %v1233_v25 = vsub.f32 0.0, %v1207_v11 }
 0x59f   : > { %v1234_v44 = vmul.f32 1.442695, %v1232_v62 }
 0x5a0   : > { %v1236_v24 = vmul.f32 1.442695, %v1233_v25 }
 0x5a1   : > { %1663 = vpow2.f32 %v1234_v44 }
 0x5a2   : > { %1665 = vpow2.f32 %v1236_v24 }
 0x5ab   : > { %v1664_v48 = vpop.eup %1663 }
 0x5ac   : > { %v1666_v39 = vpop.eup %1665  ;;  %v1278_v23 = vmul.f32 %v1664_v48, %v1241_v63  ;;  %v1280_v26 = vmul.f32 %v1664_v48, %v1246_v60  ;;  %v1282_v57 = vmul.f32 %v1664_v48, %v1251_v28  ;;  %v1284_v58 = vmul.f32 %v1664_v48, %v1256_v34 }
 0x5ad   : > { %v1279_v35 = vmul.f32 %v1666_v39, %v1241_v63  ;;  %v1281_v47 = vmul.f32 %v1666_v39, %v1246_v60  ;;  %v1283_v46 = vmul.f32 %v1666_v39, %v1251_v28  ;;  %v1285_v18 = vmul.f32 %v1666_v39, %v1256_v34 }
 0x5ae   : > { %v1294_v59 = vadd.f32 1.0, %v1278_v23  ;;  %v1296_v61 = vadd.f32 1.0, %v1280_v26  ;;  %v1286_v37 = vmul.f32 %v1664_v48, %v1261_v40  ;;  %v1298_v50 = vadd.f32 1.0, %v1282_v57 }
 0x5af   : > { %v1295_v41 = vadd.f32 1.0, %v1279_v35  ;;  %v1297_v45 = vadd.f32 1.0, %v1281_v47  ;;  %v1287_v27 = vmul.f32 %v1666_v39, %v1261_v40  ;;  %v1299_v56 = vadd.f32 1.0, %v1283_v46 }
 0x5b0   : > { %1667 = vrcp.f32 %v1294_v59  ;;  %v1288_v30 = vmul.f32 %v1664_v48, %v1266_v4  ;;  %v1300_v8 = vadd.f32 1.0, %v1284_v58  ;;  %v1289_v12 = vmul.f32 %v1666_v39, %v1266_v4 }
 0x5b1   : > { %1669 = vrcp.f32 %v1295_v41  ;;  %v1301_v17 = vadd.f32 1.0, %v1285_v18  ;;  %v1290_v29 = vmul.f32 %v1664_v48, %v1271_v0  ;;  %v1302_v36 = vadd.f32 1.0, %v1286_v37 }
 0x5b2   : > { %1671 = vrcp.f32 %v1296_v61  ;;  %v1291_v33 = vmul.f32 %v1666_v39, %v1271_v0  ;;  %v1303_v42 = vadd.f32 1.0, %v1287_v27  ;;  %v1292_v32 = vmul.f32 %v1664_v48, %v1276_v38 }
 0x5b3   : > { %1673 = vrcp.f32 %v1297_v45  ;;  %v1304_v51 = vadd.f32 1.0, %v1288_v30  ;;  %v1293_v49 = vmul.f32 %v1666_v39, %v1276_v38  ;;  %v1305_v31 = vadd.f32 1.0, %v1289_v12 }
 0x5b4   : > { %1675 = vrcp.f32 %v1298_v50  ;;  %v1306_v43 = vadd.f32 1.0, %v1290_v29  ;;  %v1307_v52 = vadd.f32 1.0, %v1291_v33  ;;  %v1308_v54 = vadd.f32 1.0, %v1292_v32 }
 0x5b5   : > { %1677 = vrcp.f32 %v1299_v56  ;;  %v1309_v11 = vadd.f32 1.0, %v1293_v49 }
 0x5b6   : > { %1679 = vrcp.f32 %v1300_v8 }
 0x5b7   : > { %1681 = vrcp.f32 %v1301_v17 }
 0x5b8   : > { %1683 = vrcp.f32 %v1302_v36 }
 0x5b9   : > { %1685 = vrcp.f32 %v1303_v42 }
 0x5ba   : > { %v1668_v53 = vpop.eup %1667  ;;  %1687 = vrcp.f32 %v1304_v51 }
 0x5bb   : > { %v1670_v55 = vpop.eup %1669  ;;  %1689 = vrcp.f32 %v1305_v31  ;;  %v1326_v62 = vmul.f32 %v1668_v53, %v2008_v3 }
 0x5bc   : > { %v1672_v25 = vpop.eup %1671  ;;  %1691 = vrcp.f32 %v1306_v43  ;;  %v1327_v44 = vmul.f32 %v1670_v55, %v2012_v5 }
 0x5bd   : > { %v1674_v24 = vpop.eup %1673  ;;  %1693 = vrcp.f32 %v1307_v52  ;;  %v1328_v63 = vmul.f32 %v1672_v25, %v2020_v9  ;;  %1342 = vst [vmem:[%s2377_s23] sm:$0xff] %v1326_v62 }
 0x5be   : > { %v1676_v60 = vpop.eup %1675  ;;  %1695 = vrcp.f32 %v1308_v54  ;;  %v1329_v3 = vmul.f32 %v1674_v24, %v2022_v10  ;;  %1343 = vst [vmem:[%s2377_s23 + $0x8] sm:$0xff] %v1327_v44 }
 0x5bf   : > { %v1678_v5 = vpop.eup %1677  ;;  %1697 = vrcp.f32 %v1309_v11  ;;  %v1330_v9 = vmul.f32 %v1676_v60, %v2004_v1  ;;  %1344 = vst [vmem:[%s2377_s23 + $0x10] sm:$0xff] %v1328_v63 }
 0x5c0   : > { %v1680_v48 = vpop.eup %1679  ;;  %v1331_v28 = vmul.f32 %v1678_v5, %v2006_v2  ;;  %1345 = vst [vmem:[%s2377_s23 + $0x18] sm:$0xff] %v1329_v3 }
 0x5c1   : > { %v1682_v39 = vpop.eup %1681  ;;  %v1332_v23 = vmul.f32 %v1680_v48, %v2014_v6  ;;  %1346 = vst [vmem:[%s2377_s23 + $0x20] sm:$0xff] %v1330_v9 }
 0x5c2   : > { %v1684_v10 = vpop.eup %1683  ;;  %v1333_v34 = vmul.f32 %v1682_v39, %v2016_v7  ;;  %1347 = vst [vmem:[%s2377_s23 + $0x28] sm:$0xff] %v1331_v28 }
 0x5c3   : > { %v1686_v35 = vpop.eup %1685  ;;  %v1334_v1 = vmul.f32 %v1684_v10, %v2032_v15  ;;  %1348 = vst [vmem:[%s2377_s23 + $0x30] sm:$0xff] %v1332_v23 }
 0x5c4   : > { %v1688_v26 = vpop.eup %1687  ;;  %v1335_v2 = vmul.f32 %v1686_v35, %v2034_v16  ;;  %1349 = vst [vmem:[%s2377_s23 + $0x38] sm:$0xff] %v1333_v34 }
 0x5c5   : > { %v1690_v47 = vpop.eup %1689  ;;  %v1336_v6 = vmul.f32 %v1688_v26, %v2028_v13  ;;  %1350 = vst [vmem:[%s2377_s23 + $0x40] sm:$0xff] %v1334_v1 }
 0x5c6   : > { %v1692_v57 = vpop.eup %1691  ;;  %v1337_v59 = vmul.f32 %v1690_v47, %v2030_v14  ;;  %1351 = vst [vmem:[%s2377_s23 + $0x48] sm:$0xff] %v1335_v2 }
 0x5c7   : > { %v1694_v7 = vpop.eup %1693  ;;  %v1338_v15 = vmul.f32 %v1692_v57, %v2044_v21  ;;  %1352 = vst [vmem:[%s2377_s23 + $0x50] sm:$0xff] %v1336_v6 }
 0x5c8   : > { %v1696_v16 = vpop.eup %1695  ;;  %v1339_v40 = vmul.f32 %v1694_v7, %v2046_v22  ;;  %1353 = vst [vmem:[%s2377_s23 + $0x58] sm:$0xff] %v1337_v59 }
 0x5c9   : > { %v1698_v13 = vpop.eup %1697  ;;  %v1340_v46 = vmul.f32 %v1696_v16, %v2040_v19  ;;  %1354 = vst [vmem:[%s2377_s23 + $0x60] sm:$0xff] %v1338_v15 }
 0x5ca   : > { %v1341_v14 = vmul.f32 %v1698_v13, %v2042_v20  ;;  %1355 = vst [vmem:[%s2377_s23 + $0x68] sm:$0xff] %v1339_v40 }
 0x5cb   : > { %1356 = vst [vmem:[%s2377_s23 + $0x70] sm:$0xff] %v1340_v46 }
 0x5cc   : > { %1357 = vst [vmem:[%s2377_s23 + $0x78] sm:$0xff] %v1341_v14 }
 0x5cd   : > { %1742 = shalt.err (!%p1739_p2)
}
 0x5ce   : > { %s1743_s20 = scalar_lea.hbm %s2409_s13, 2048  ;;  %s1747_s22 = scalar_lea.hbm %s2473_s14, 4096 }
 0x5cf   : > { %p1744_p4 = scmp.ne.s32.totalorder %s2409_s13, %s1743_s20  ;;  %p1748_p9 = scmp.lt.u32.totalorder %s2409_s13, %s2473_s14 }
 0x5d0   : > { %p1749_p1 = scmp.lt.u32.totalorder %s1747_s22, %s1743_s20  ;;  %p1751_p6 = scmp.lt.u32.totalorder %s1743_s20, %s2409_s13 }
 0x5d1   : > { %p1745_p5 = pnand %p1744_p4, %p2490_p11 }
 0x5d2   : > { %p1750_p3 = por %p1749_p1, %p1748_p9 }
 0x5d3   : > { %p1746_p7 = pneg %p1745_p5 }
 0x5d4   : > { %p1752_p12 = por %p1751_p6, %p1750_p3 }
 0x5d6   : > { %p1753_p13 = pnand %p1752_p12, %p1746_p7 }
 0x5d8   : > { %1756 = shalt.err (!%p1753_p13)
}
 0x5d9   : > { %s1810_s17 = smov 256   ;;  %s1811_s25 = smov 16  }
 0x5da   : > { %1588 = dma.vmem_to_hbm [thread:$0]  (%p2490_p11), %s2411_s24, 2048, %s2409_s13, %s1359_s30, %s1810_s17, %s1810_s17, %s1811_s25  }
 0x5db PF: > { %s2491_s29 = sld [smem:[#allocation9_spill]]  ;;  %p2492_p8 = scmp.ne.s32.totalorder %s2487_s27, 0 }
 0x5dc   : > { %p2493_p10 = scmp.ge.s32.totalorder %s1795_s18, 2 }
 0x5de   : > { %p1595_p0 = pnand %p2493_p10, %p2492_p8 }
 0x5e1   : > { %s1387_s23 = sand.u32 1, %s2491_s29  }
 0x5e2   : > { %s1388_s20 = scalar_lea.sflag [#allocation5], %s1387_s23 }
 0x5e3   : > { %1778 = dma.done.wait (!%p1595_p0), %s1388_s20, 2048  }
 0x5e4   : > { %1780 = vsyncadd (!%p1595_p0), %s1388_s20, 4294965248  ;;  %s2494_s18 = sld [smem:[#allocation11_spill]]  ;;  %s2495_s21 = sld [smem:[#allocation10_spill]] }
 0x5e5   : > { %s2496_s17 = sld [smem:[#allocation12_spill]]  ;;  %s2497_s15 = smov %s1787_s16 }
 0x5ea   : > { %p29_p2 = scmp.ge.s32.totalorder %s2494_s18, 4   ;;  %s2498_s16 = smov %s2495_s21 }
 0x5ec   :  { %31 = sbr.rel (!%p29_p2) target bundleno = 8 (0x8), region = 121 }
 0x5f3   :  { %1393 = vsyncpa [#allocation4], 1 }
 0x5f4   :  { %1395 = vsyncpa [#allocation4 + $0x1], 1 }
 0x5f5   :  { %1396 = vsyncpa [#allocation5], 1 }
 0x5f6   :  { %1398 = vsyncpa [#allocation5 + $0x1], 1 }

</bundles_post_ra>
